<compile_context>
chip_gen: v7x
topology: tpu7x:2x2x1
jax: 0.10.0
libtpu: 0.0.40
codegen_flags: <defaults>
</compile_context>

<pallas_src>
import jax
import jax.numpy as jnp
from jax.experimental import pallas as pl
from jax.experimental.pallas import tpu as pltpu


def _round_up(n, m):
    return ((n + m - 1) // m) * m


def _vmem_block_bytes(shape, dtype):
    """Conservative VMEM footprint of one buffer (sublane/lane tile padded)."""
    itemsize = jnp.dtype(dtype).itemsize
    packing = max(1, 4 // itemsize)
    s = (1, 1) + tuple(shape)
    lead = 1
    for d in s[:-2]:
        lead *= d
    return lead * _round_up(s[-2], 8 * packing) * _round_up(s[-1], 128) * itemsize


def _critic_kernel(x_ref, keep_ref, w_ih_t_ref, w_hh_t_ref, b_ref,
                   w_proj_row_ref, out_ref, h_scr, c_scr, gx_scr, vals_scr):
    """One (batch_tile, time_chunk): LSTM recurrence + fused value head.

    Grid = (batch_tiles, time_chunks). The time axis is "arbitrary"
    (sequential) and carries (h, c) across chunks via VMEM scratch.
    """
    t_chunk, b_tile, _ = x_ref.shape
    H = h_scr.shape[-1]

    # hc=None at the start of every rollout / batch tile -> zero state.
    @pl.when(pl.program_id(1) == 0)
    def _():
        h_scr[...] = jnp.zeros_like(h_scr)
        c_scr[...] = jnp.zeros_like(c_scr)

    # Loop-invariant loads hoisted off the serial critical path.
    w_hh_t = w_hh_t_ref[...]              # (H, 4H)  matmul dtype
    w_proj = w_proj_row_ref[...]          # (1, H)   f32
    mm_dtype = w_hh_t.dtype

    # ---- Hoisted input projection: ONE big MXU matmul per chunk. ----
    # gates_x[t] = x[t] @ W_ih^T + (b_ih + b_hh), computed for the whole chunk
    # at full MXU throughput instead of t_chunk tiny matmuls inside the loop.
    x_blk = x_ref[...]                                        # (t, b, D)
    gx = jnp.dot(x_blk.reshape(t_chunk * b_tile, x_blk.shape[-1]),
                 w_ih_t_ref[...], preferred_element_type=jnp.float32)
    gx = gx + b_ref[...]                                      # fused bias, once
    gx_scr[...] = gx.reshape(t_chunk, b_tile, 4 * H)

    def step(t, carry):
        h, c = carry                                          # f32 (b_tile, H)
        # Episode-boundary reset applied *before* consuming this step.
        keep_t = keep_ref[t]                                  # (b_tile, 1)
        h = h * keep_t
        c = c * keep_t
        # Only the recurrent projection remains on the serial chain.
        gates = gx_scr[t] + jnp.dot(h.astype(mm_dtype), w_hh_t,
                                    preferred_element_type=jnp.float32)
        # Gate columns were reordered to (i, f, o, g) in the wrapper:
        # one sigmoid over [:, :3H], one tanh over [:, 3H:].
        s = jax.nn.sigmoid(gates[:, :3 * H])
        i_g = s[:, :H]
        f_g = s[:, H:2 * H]
        o_g = s[:, 2 * H:]
        g_g = jnp.tanh(gates[:, 3 * H:])
        c = f_g * c + i_g * g_g
        h = o_g * jnp.tanh(c)
        # Value head per step (one mul + lane-reduce, filler under the MXU/EUP
        # latency); no (t_chunk, b_tile, H) history scratch needed.
        vals_scr[t] = jnp.sum(h * w_proj, axis=-1)[None, :]   # (1, b_tile)
        return (h, c)

    # Largest unroll whose live set (gates + h + c tiles) stays well inside
    # the 64 x 4 KiB vreg file (no spills on the sequential critical path).
    live_bytes = b_tile * (4 * H + 2 * H) * 4
    if live_bytes <= 48 * 1024:
        unroll = min(t_chunk, 8)
    elif live_bytes <= 128 * 1024:
        unroll = min(t_chunk, 4)
    else:
        unroll = min(t_chunk, 2)

    h_fin, c_fin = jax.lax.fori_loop(
        0, t_chunk, step, (h_scr[...], c_scr[...]), unroll=unroll)
    h_scr[...] = h_fin
    c_scr[...] = c_fin

    # Single lane-dense output write per chunk: (b_tile, t_chunk).
    vals2d = vals_scr[...].reshape(t_chunk, b_tile)
    out_ref[...] = vals2d.T.astype(out_ref.dtype)


def critic_forward(x, reset_idx, params, *, t_chunk=None, b_tile=None,
                   matmul_dtype=jnp.bfloat16):
    """Critic.forward: LSTM-with-reset over time, then Linear(hidden, 1).

    x:         (T, B, in_dim) float, time-major (nn.LSTM batch_first=False).
    reset_idx: (T, B) {0,1} mask; 1 resets (h, c) before consuming that step.
    Returns    (T, B, 1) float32 values.

    `matmul_dtype` only affects MXU inputs (x, h-cast, weights); (h, c) state,
    biases and all elementwise/EUP math stay float32. bf16 (default) is the
    native MXU dtype on v6e/v7x and halves x/weight DMA; pass jnp.float32 for
    bit-tight agreement with an f32 reference.
    """
    # TODO(synk): self.hc persistence across forward() calls is not threaded
    # through (state starts at zeros each call; final (h, c) is not returned).
    T, B, D = x.shape
    H = params["w_hh"].shape[1]
    assert params["w_ih"].shape[0] == 4 * H
    mm_itemsize = jnp.dtype(matmul_dtype).itemsize

    # ---- vreg-friendly padding (zero padding is LSTM-safe: padded hidden
    #      units have zero weights/bias, so their h, c stay exactly 0). ----
    # Small H: pad to 32 so 4H is a 128-lane multiple. H >= 96: pad to 128 so
    # the per-gate slices in the step loop land on lane-tile boundaries.
    H_pad = _round_up(H, 128) if H >= 96 else _round_up(H, 32)

    # Batch alignment follows sublane packing of the matmul dtype (8 for f32,
    # 16 for bf16) so in-kernel reshapes stay tile-aligned.
    b_align = 8 * max(1, 4 // mm_itemsize)
    if b_tile is None:
        B8 = _round_up(B, b_align)
        if B >= 16:
            # >= 2 batch tiles so the "parallel" grid axis can shard across
            # v7x's two TensorCores; cap at 256 rows (fills the 256-row MXU
            # on v6e/v7x; v5e issues two 128-row pushes per step).
            b_tile = min(_round_up((B8 + 1) // 2, b_align), 256)
        else:
            b_tile = B8
    b_tile = _round_up(b_tile, b_align)
    B_pad = _round_up(B, b_tile)
    n_btiles = B_pad // b_tile

    if t_chunk is None:
        # VMEM budget for the chunk-scaled buffers (x double-buffer, gates_x
        # scratch, keep, out): stay well under v7x's 64 MiB total.
        per_t = b_tile * (2 * D * mm_itemsize       # x (double-buffered)
                          + 4 * H_pad * 4           # gates_x scratch (f32)
                          + 2 * 128 * 4             # keep (lane-padded, dbl)
                          + 3 * 4)                  # out + vals (lane-dense)
        budget = 36 << 20
        if T * per_t <= budget:
            t_chunk = T                             # single time chunk
        else:
            # Multi-chunk: keep the lane-dense (b_tile, t_chunk) output block
            # 128-lane aligned.
            t_chunk = max(128, (budget // per_t) // 128 * 128)
    elif t_chunk < T:
        t_chunk = _round_up(t_chunk, 128)
    T_pad = _round_up(T, t_chunk)
    n_chunks = T_pad // t_chunk

    # ---- gate prep: PyTorch (i, f, g, o) -> (i, f, o, g), per-gate pad. ----
    def prep_gates(w):                    # (4H, ...) -> (4*H_pad, ...)
        i, f, g, o = jnp.split(w, 4, axis=0)
        pad = [(0, H_pad - H)] + [(0, 0)] * (w.ndim - 1)
        return jnp.concatenate([jnp.pad(blk, pad) for blk in (i, f, o, g)],
                               axis=0)

    w_ih = prep_gates(params["w_ih"])                                    # (4Hp, D)
    w_hh = prep_gates(jnp.pad(params["w_hh"], ((0, 0), (0, H_pad - H)))) # (4Hp, Hp)
    bias = prep_gates(params["b_ih"] + params["b_hh"])                   # (4Hp,)

    w_ih_t = w_ih.T.astype(matmul_dtype)                     # (D, 4Hp)
    w_hh_t = w_hh.T.astype(matmul_dtype)                     # (Hp, 4Hp)
    b_row = bias.reshape(1, 4 * H_pad).astype(jnp.float32)
    w_proj_row = jnp.pad(params["w_proj"],
                         ((0, 0), (0, H_pad - H))).astype(jnp.float32)   # (1, Hp)

    # ---- pad activations; precompute keep = 1 - reset once. ----
    x_p = jnp.pad(x.astype(matmul_dtype),
                  ((0, T_pad - T), (0, B_pad - B), (0, 0)))
    keep = (1.0 - reset_idx.astype(jnp.float32)).reshape(T, B, 1)
    keep_p = jnp.pad(keep, ((0, T_pad - T), (0, B_pad - B), (0, 0)))

    # ---- explicit scoped-VMEM limit from a conservative footprint model. ----
    vmem_est = (
        2 * _vmem_block_bytes((t_chunk, b_tile, D), matmul_dtype)        # x
        + 2 * _vmem_block_bytes((t_chunk, b_tile, 1), jnp.float32)       # keep
        + 2 * _vmem_block_bytes((b_tile, t_chunk), jnp.float32)          # out
        + 2 * _vmem_block_bytes((D, 4 * H_pad), matmul_dtype)            # w_ih
        + 2 * _vmem_block_bytes((H_pad, 4 * H_pad), matmul_dtype)        # w_hh
        + 2 * _vmem_block_bytes((1, 4 * H_pad), jnp.float32)             # bias
        + 2 * _vmem_block_bytes((1, H_pad), jnp.float32)                 # w_proj
        + 2 * _vmem_block_bytes((b_tile, H_pad), jnp.float32)            # h, c
        + _vmem_block_bytes((t_chunk, b_tile, 4 * H_pad), jnp.float32)   # gates_x
        + _vmem_block_bytes((t_chunk, 1, b_tile), jnp.float32))          # values
    vmem_limit = max(int(vmem_est * 1.3) + (2 << 20), 32 << 20)

    # NOTE: the constant-index weight operands could be single-buffered with
    # pipeline_mode=pl.Buffered(1) to halve their VMEM at large H; kept at the
    # default buffering here for portability.

    out_bt = pl.pallas_call(
        _critic_kernel,
        out_shape=jax.ShapeDtypeStruct((B_pad, T_pad), jnp.float32),
        grid_spec=pltpu.PrefetchScalarGridSpec(
            num_scalar_prefetch=0,
            grid=(n_btiles, n_chunks),
            in_specs=[
                pl.BlockSpec((t_chunk, b_tile, D), lambda bi, ci: (ci, bi, 0)),
                pl.BlockSpec((t_chunk, b_tile, 1), lambda bi, ci: (ci, bi, 0)),
                pl.BlockSpec((D, 4 * H_pad), lambda bi, ci: (0, 0)),
                pl.BlockSpec((H_pad, 4 * H_pad), lambda bi, ci: (0, 0)),
                pl.BlockSpec((1, 4 * H_pad), lambda bi, ci: (0, 0)),
                pl.BlockSpec((1, H_pad), lambda bi, ci: (0, 0)),
            ],
            # Lane-dense output blocks (a last-dim-of-1 output would lower to
            # masked 1-lane stores and narrow writeback DMAs).
            out_specs=pl.BlockSpec((b_tile, t_chunk),
                                   lambda bi, ci: (bi, ci)),
            scratch_shapes=[
                pltpu.VMEM((b_tile, H_pad), jnp.float32),               # h
                pltpu.VMEM((b_tile, H_pad), jnp.float32),               # c
                pltpu.VMEM((t_chunk, b_tile, 4 * H_pad), jnp.float32),  # gates_x
                pltpu.VMEM((t_chunk, 1, b_tile), jnp.float32),          # values
            ],
        ),
        compiler_params=pltpu.CompilerParams(
            # Batch tiles are independent (v7x's two TensorCores); the time
            # axis is the recurrence and MUST stay sequential ("arbitrary").
            dimension_semantics=("parallel", "arbitrary"),
            vmem_limit_bytes=vmem_limit),
    )(x_p, keep_p, w_ih_t, w_hh_t, b_row, w_proj_row)

    # (B_pad, T_pad) -> (T, B, 1); the tiny Linear bias is folded in here
    # instead of shipping a degenerate (1, 1) operand into the kernel.
    vals = out_bt[:B, :T].T[:, :, None]
    return vals + params["b_proj"].reshape(1, 1, 1).astype(jnp.float32)


def critic_forward_ref(x, reset_idx, params):
    """Pure-JAX reference (mirrors torch LSTMCell loop + Linear)."""
    B = x.shape[1]
    H = params["w_hh"].shape[1]

    def step(carry, inp):
        h, c = carry
        x_t, r_t = inp
        keep = (1.0 - r_t)[:, None]
        h = h * keep
        c = c * keep
        gates = (x_t @ params["w_ih"].T + h @ params["w_hh"].T
                 + params["b_ih"] + params["b_hh"])
        i_g, f_g, g_g, o_g = jnp.split(gates, 4, axis=-1)
        i_g = jax.nn.sigmoid(i_g)
        f_g = jax.nn.sigmoid(f_g)
        g_g = jnp.tanh(g_g)
        o_g = jax.nn.sigmoid(o_g)
        c = f_g * c + i_g * g_g
        h = o_g * jnp.tanh(c)
        return (h, c), h

    init = (jnp.zeros((B, H), jnp.float32), jnp.zeros((B, H), jnp.float32))
    _, hs = jax.lax.scan(step, init, (x, reset_idx))
    return hs @ params["w_proj"].T + params["b_proj"]


def init_params(key, in_dim, hidden_dim):
    ks = jax.random.split(key, 6)
    bound = 1.0 / jnp.sqrt(hidden_dim)
    u = lambda k, shape: jax.random.uniform(
        k, shape, dtype=jnp.float32, minval=-bound, maxval=bound)
    return {
        "w_ih": u(ks[0], (4 * hidden_dim, in_dim)),      # nn.LSTM weight_ih_l0
        "w_hh": u(ks[1], (4 * hidden_dim, hidden_dim)),  # weight_hh_l0
        "b_ih": u(ks[2], (4 * hidden_dim,)),
        "b_hh": u(ks[3], (4 * hidden_dim,)),
        "w_proj": u(ks[4], (1, hidden_dim)),             # nn.Linear(hidden, 1)
        "b_proj": u(ks[5], (1,)),
    }


if __name__ == "__main__":
    T, B, IN_DIM, HIDDEN = 8, 2, 16, 8   # seq=8, batch=2, in_dim=16, hidden_dim=8

    key = jax.random.PRNGKey(0)
    kp, kx, kr = jax.random.split(key, 3)
    params = init_params(kp, IN_DIM, HIDDEN)

    x = jax.random.normal(kx, (T, B, IN_DIM), dtype=jnp.float32)
    # reset_idx as a per-step {0,1} mask; step 0 starts a fresh episode.
    reset_idx = (jax.random.uniform(kr, (T, B)) < 0.25).astype(jnp.float32)
    reset_idx = reset_idx.at[0].set(1.0)

    ref = critic_forward_ref(x, reset_idx, params)

    # f32 MXU-input path: tight check against the f32 reference.
    out = critic_forward(x, reset_idx, params, matmul_dtype=jnp.float32)
    out = jax.block_until_ready(out)
    assert out.shape == (T, B, 1)
    assert jnp.allclose(out, ref, atol=2e-3, rtol=2e-3), (
        f"f32 max abs err {jnp.max(jnp.abs(out - ref))}")

    # Default bf16 MXU-input path (recommended on v6e/v7x): looser tolerance.
    out_bf16 = jax.block_until_ready(critic_forward(x, reset_idx, params))
    assert out_bf16.shape == (T, B, 1)
    assert jnp.allclose(out_bf16, ref, atol=5e-2, rtol=5e-2), (
        f"bf16 max abs err {jnp.max(jnp.abs(out_bf16 - ref))}")

    print("KERNEL_OK")
</pallas_src>

<mosaic_0001>
module attributes {stable_mosaic.version = 11 : i64} {
  func.func @_critic_kernel(%arg0: i32, %arg1: i32, %arg2: memref<8x8x16xf32, #tpu.memory_space<vmem>>, %arg3: memref<8x8x1xf32, #tpu.memory_space<vmem>>, %arg4: memref<16x128xf32, #tpu.memory_space<vmem>>, %arg5: memref<32x128xf32, #tpu.memory_space<vmem>>, %arg6: memref<1x128xf32, #tpu.memory_space<vmem>>, %arg7: memref<1x32xf32, #tpu.memory_space<vmem>>, %arg8: memref<8x8xf32, #tpu.memory_space<vmem>>, %arg9: memref<8x32xf32, #tpu.memory_space<vmem>>, %arg10: memref<8x32xf32, #tpu.memory_space<vmem>>, %arg11: memref<8x8x128xf32, #tpu.memory_space<vmem>>, %arg12: memref<8x1x8xf32, #tpu.memory_space<vmem>>) attributes {dimension_semantics = [#tpu.dimension_semantics<parallel>, #tpu.dimension_semantics<arbitrary>], iteration_bounds = array<i64: 1, 1>, scalar_prefetch = 0 : i64, scratch_operands = 4 : i64, tpu.core_type = #tpu.core_type<tc>, window_params = [{transform_indices = @transform_0, window_bounds = array<i64: 8, 8, 16>}, {transform_indices = @transform_1, window_bounds = array<i64: 8, 8, 1>}, {pipeline_mode = #tpu.pipeline_mode<synchronous>, transform_indices = @transform_2, window_bounds = array<i64: 16, 128>}, {pipeline_mode = #tpu.pipeline_mode<synchronous>, transform_indices = @transform_3, window_bounds = array<i64: 32, 128>}, {pipeline_mode = #tpu.pipeline_mode<synchronous>, transform_indices = @transform_4, window_bounds = array<i64: 1, 128>}, {pipeline_mode = #tpu.pipeline_mode<synchronous>, transform_indices = @transform_5, window_bounds = array<i64: 1, 32>}, {transform_indices = @transform_6, window_bounds = array<i64: 8, 8>}]} {
    %c0_i32 = arith.constant 0 : i32
    %0 = arith.cmpi eq, %arg1, %c0_i32 : i32
    %1 = arith.extui %0 : i1 to i32
    %c0_i32_0 = arith.constant 0 : i32
    %2 = arith.cmpi ne, %1, %c0_i32_0 : i32
    scf.if %2 {
      %cst_100 = arith.constant 0.000000e+00 : f32
      %310 = vector.broadcast %cst_100 : f32 to vector<8x32xf32>
      %c0_101 = arith.constant 0 : index
      %c0_102 = arith.constant 0 : index
      %311 = vector.load %arg9[%c0_101, %c0_102] : memref<8x32xf32, #tpu.memory_space<vmem>>, vector<8x32xf32>
      tpu.vector_store %arg9[%c0_101, %c0_102], %310 {strides = array<i32>} : memref<8x32xf32, #tpu.memory_space<vmem>>, vector<8x32xf32>,
      %cst_103 = arith.constant 0.000000e+00 : f32
      %312 = vector.broadcast %cst_103 : f32 to vector<8x32xf32>
      %c0_104 = arith.constant 0 : index
      %c0_105 = arith.constant 0 : index
      %313 = vector.load %arg10[%c0_104, %c0_105] : memref<8x32xf32, #tpu.memory_space<vmem>>, vector<8x32xf32>
      tpu.vector_store %arg10[%c0_104, %c0_105], %312 {strides = array<i32>} : memref<8x32xf32, #tpu.memory_space<vmem>>, vector<8x32xf32>,
    } else {
    }
    %c0 = arith.constant 0 : index
    %c0_1 = arith.constant 0 : index
    %3 = vector.load %arg5[%c0, %c0_1] : memref<32x128xf32, #tpu.memory_space<vmem>>, vector<32x128xf32>
    %c0_2 = arith.constant 0 : index
    %c0_3 = arith.constant 0 : index
    %4 = vector.load %arg7[%c0_2, %c0_3] : memref<1x32xf32, #tpu.memory_space<vmem>>, vector<1x32xf32>
    %c0_4 = arith.constant 0 : index
    %c0_5 = arith.constant 0 : index
    %c0_6 = arith.constant 0 : index
    %5 = vector.load %arg2[%c0_4, %c0_5, %c0_6] : memref<8x8x16xf32, #tpu.memory_space<vmem>>, vector<8x8x16xf32>
    %6 = vector.shape_cast %5 : vector<8x8x16xf32> to vector<64x16xf32>
    %c0_7 = arith.constant 0 : index
    %c0_8 = arith.constant 0 : index
    %7 = vector.load %arg4[%c0_7, %c0_8] : memref<16x128xf32, #tpu.memory_space<vmem>>, vector<16x128xf32>
    %cst = arith.constant dense<0.000000e+00> : vector<64x128xf32>
    %8 = tpu.matmul %6, %7, %cst {dimension_numbers = #tpu.dot_dimension_numbers<[1], [0], [0], [1], [0, 0, 1, 1], [], []>} : vector<64x16xf32>, vector<16x128xf32>, vector<64x128xf32> -> vector<64x128xf32>
    %c0_9 = arith.constant 0 : index
    %c0_10 = arith.constant 0 : index
    %9 = vector.load %arg6[%c0_9, %c0_10] : memref<1x128xf32, #tpu.memory_space<vmem>>, vector<1x128xf32>
    %10 = vector.broadcast %9 : vector<1x128xf32> to vector<64x128xf32>
    %11 = arith.addf %8, %10 : vector<64x128xf32>
    %12 = vector.shape_cast %11 : vector<64x128xf32> to vector<8x8x128xf32>
    %c0_11 = arith.constant 0 : index
    %c0_12 = arith.constant 0 : index
    %c0_13 = arith.constant 0 : index
    %13 = vector.load %arg11[%c0_11, %c0_12, %c0_13] : memref<8x8x128xf32, #tpu.memory_space<vmem>>, vector<8x8x128xf32>
    tpu.vector_store %arg11[%c0_11, %c0_12, %c0_13], %12 {strides = array<i32>} : memref<8x8x128xf32, #tpu.memory_space<vmem>>, vector<8x8x128xf32>,
    %c0_14 = arith.constant 0 : index
    %c0_15 = arith.constant 0 : index
    %14 = vector.load %arg9[%c0_14, %c0_15] : memref<8x32xf32, #tpu.memory_space<vmem>>, vector<8x32xf32>
    %c0_16 = arith.constant 0 : index
    %c0_17 = arith.constant 0 : index
    %15 = vector.load %arg10[%c0_16, %c0_17] : memref<8x32xf32, #tpu.memory_space<vmem>>, vector<8x32xf32>
    %c0_i32_18 = arith.constant 0 : i32
    %16 = arith.index_cast %c0_i32_18 : i32 to index
    %c0_19 = arith.constant 0 : index
    %c0_20 = arith.constant 0 : index
    %17 = vector.load %arg3[%16, %c0_19, %c0_20] : memref<8x8x1xf32, #tpu.memory_space<vmem>>, vector<1x8x1xf32>
    %18 = vector.shape_cast %17 : vector<1x8x1xf32> to vector<8x1xf32>
    %19 = vector.broadcast %18 : vector<8x1xf32> to vector<8x32xf32>
    %20 = arith.mulf %14, %19 : vector<8x32xf32>
    %21 = vector.broadcast %18 : vector<8x1xf32> to vector<8x32xf32>
    %22 = arith.mulf %15, %21 : vector<8x32xf32>
    %23 = arith.index_cast %c0_i32_18 : i32 to index
    %c0_21 = arith.constant 0 : index
    %c0_22 = arith.constant 0 : index
    %24 = vector.load %arg11[%23, %c0_21, %c0_22] : memref<8x8x128xf32, #tpu.memory_space<vmem>>, vector<1x8x128xf32>
    %25 = vector.shape_cast %24 : vector<1x8x128xf32> to vector<8x128xf32>
    %cst_23 = arith.constant dense<0.000000e+00> : vector<8x128xf32>
    %26 = tpu.matmul %20, %3, %cst_23 {dimension_numbers = #tpu.dot_dimension_numbers<[1], [0], [0], [1], [0, 0, 1, 1], [], []>} : vector<8x32xf32>, vector<32x128xf32>, vector<8x128xf32> -> vector<8x128xf32>
    %27 = arith.addf %25, %26 : vector<8x128xf32>
    %28 = vector.extract_strided_slice %27 {offsets = [0, 0], sizes = [8, 96], strides = [1, 1]} : vector<8x128xf32> to vector<8x96xf32>
    %29 = arith.negf %28 : vector<8x96xf32>
    %30 = math.exp %29 : vector<8x96xf32>
    %cst_24 = arith.constant 1.000000e+00 : f32
    %31 = vector.broadcast %cst_24 : f32 to vector<8x96xf32>
    %32 = arith.addf %31, %30 : vector<8x96xf32>
    %33 = arith.divf %31, %32 : vector<8x96xf32>
    %34 = vector.extract_strided_slice %33 {offsets = [0, 0], sizes = [8, 32], strides = [1, 1]} : vector<8x96xf32> to vector<8x32xf32>
    %35 = vector.extract_strided_slice %33 {offsets = [0, 32], sizes = [8, 32], strides = [1, 1]} : vector<8x96xf32> to vector<8x32xf32>
    %36 = vector.extract_strided_slice %33 {offsets = [0, 64], sizes = [8, 32], strides = [1, 1]} : vector<8x96xf32> to vector<8x32xf32>
    %37 = vector.extract_strided_slice %27 {offsets = [0, 96], sizes = [8, 32], strides = [1, 1]} : vector<8x128xf32> to vector<8x32xf32>
    %38 = math.tanh %37 : vector<8x32xf32>
    %39 = arith.mulf %35, %22 : vector<8x32xf32>
    %40 = arith.mulf %34, %38 : vector<8x32xf32>
    %41 = arith.addf %39, %40 : vector<8x32xf32>
    %42 = math.tanh %41 : vector<8x32xf32>
    %43 = arith.mulf %36, %42 : vector<8x32xf32>
    %44 = vector.broadcast %4 : vector<1x32xf32> to vector<8x32xf32>
    %45 = arith.mulf %43, %44 : vector<8x32xf32>
    %cst_25 = arith.constant dense<0.000000e+00> : vector<8xf32>
    %46 = vector.multi_reduction <add>, %45, %cst_25 [1] : vector<8x32xf32> to vector<8xf32>
    %47 = vector.shape_cast %46 : vector<8xf32> to vector<1x8xf32>
    %48 = arith.index_cast %c0_i32_18 : i32 to index
    %c0_26 = arith.constant 0 : index
    %c0_27 = arith.constant 0 : index
    %49 = vector.load %arg12[%48, %c0_26, %c0_27] : memref<8x1x8xf32, #tpu.memory_space<vmem>>, vector<1x1x8xf32>
    %50 = vector.shape_cast %49 : vector<1x1x8xf32> to vector<1x8xf32>
    %51 = vector.shape_cast %47 : vector<1x8xf32> to vector<1x1x8xf32>
    tpu.vector_store %arg12[%48, %c0_26, %c0_27], %51 {strides = array<i32>} : memref<8x1x8xf32, #tpu.memory_space<vmem>>, vector<1x1x8xf32>,
    %c1_i32 = arith.constant 1 : i32
    %52 = arith.index_cast %c1_i32 : i32 to index
    %c0_28 = arith.constant 0 : index
    %c0_29 = arith.constant 0 : index
    %53 = vector.load %arg3[%52, %c0_28, %c0_29] : memref<8x8x1xf32, #tpu.memory_space<vmem>>, vector<1x8x1xf32>
    %54 = vector.shape_cast %53 : vector<1x8x1xf32> to vector<8x1xf32>
    %55 = vector.broadcast %54 : vector<8x1xf32> to vector<8x32xf32>
    %56 = arith.mulf %43, %55 : vector<8x32xf32>
    %57 = vector.broadcast %54 : vector<8x1xf32> to vector<8x32xf32>
    %58 = arith.mulf %41, %57 : vector<8x32xf32>
    %59 = arith.index_cast %c1_i32 : i32 to index
    %c0_30 = arith.constant 0 : index
    %c0_31 = arith.constant 0 : index
    %60 = vector.load %arg11[%59, %c0_30, %c0_31] : memref<8x8x128xf32, #tpu.memory_space<vmem>>, vector<1x8x128xf32>
    %61 = vector.shape_cast %60 : vector<1x8x128xf32> to vector<8x128xf32>
    %cst_32 = arith.constant dense<0.000000e+00> : vector<8x128xf32>
    %62 = tpu.matmul %56, %3, %cst_32 {dimension_numbers = #tpu.dot_dimension_numbers<[1], [0], [0], [1], [0, 0, 1, 1], [], []>} : vector<8x32xf32>, vector<32x128xf32>, vector<8x128xf32> -> vector<8x128xf32>
    %63 = arith.addf %61, %62 : vector<8x128xf32>
    %64 = vector.extract_strided_slice %63 {offsets = [0, 0], sizes = [8, 96], strides = [1, 1]} : vector<8x128xf32> to vector<8x96xf32>
    %65 = arith.negf %64 : vector<8x96xf32>
    %66 = math.exp %65 : vector<8x96xf32>
    %cst_33 = arith.constant 1.000000e+00 : f32
    %67 = vector.broadcast %cst_33 : f32 to vector<8x96xf32>
    %68 = arith.addf %67, %66 : vector<8x96xf32>
    %69 = arith.divf %67, %68 : vector<8x96xf32>
    %70 = vector.extract_strided_slice %69 {offsets = [0, 0], sizes = [8, 32], strides = [1, 1]} : vector<8x96xf32> to vector<8x32xf32>
    %71 = vector.extract_strided_slice %69 {offsets = [0, 32], sizes = [8, 32], strides = [1, 1]} : vector<8x96xf32> to vector<8x32xf32>
    %72 = vector.extract_strided_slice %69 {offsets = [0, 64], sizes = [8, 32], strides = [1, 1]} : vector<8x96xf32> to vector<8x32xf32>
    %73 = vector.extract_strided_slice %63 {offsets = [0, 96], sizes = [8, 32], strides = [1, 1]} : vector<8x128xf32> to vector<8x32xf32>
    %74 = math.tanh %73 : vector<8x32xf32>
    %75 = arith.mulf %71, %58 : vector<8x32xf32>
    %76 = arith.mulf %70, %74 : vector<8x32xf32>
    %77 = arith.addf %75, %76 : vector<8x32xf32>
    %78 = math.tanh %77 : vector<8x32xf32>
    %79 = arith.mulf %72, %78 : vector<8x32xf32>
    %80 = vector.broadcast %4 : vector<1x32xf32> to vector<8x32xf32>
    %81 = arith.mulf %79, %80 : vector<8x32xf32>
    %cst_34 = arith.constant dense<0.000000e+00> : vector<8xf32>
    %82 = vector.multi_reduction <add>, %81, %cst_34 [1] : vector<8x32xf32> to vector<8xf32>
    %83 = vector.shape_cast %82 : vector<8xf32> to vector<1x8xf32>
    %84 = arith.index_cast %c1_i32 : i32 to index
    %c0_35 = arith.constant 0 : index
    %c0_36 = arith.constant 0 : index
    %85 = vector.load %arg12[%84, %c0_35, %c0_36] : memref<8x1x8xf32, #tpu.memory_space<vmem>>, vector<1x1x8xf32>
    %86 = vector.shape_cast %85 : vector<1x1x8xf32> to vector<1x8xf32>
    %87 = vector.shape_cast %83 : vector<1x8xf32> to vector<1x1x8xf32>
    tpu.vector_store %arg12[%84, %c0_35, %c0_36], %87 {strides = array<i32>} : memref<8x1x8xf32, #tpu.memory_space<vmem>>, vector<1x1x8xf32>,
    %c2_i32 = arith.constant 2 : i32
    %88 = arith.index_cast %c2_i32 : i32 to index
    %c0_37 = arith.constant 0 : index
    %c0_38 = arith.constant 0 : index
    %89 = vector.load %arg3[%88, %c0_37, %c0_38] : memref<8x8x1xf32, #tpu.memory_space<vmem>>, vector<1x8x1xf32>
    %90 = vector.shape_cast %89 : vector<1x8x1xf32> to vector<8x1xf32>
    %91 = vector.broadcast %90 : vector<8x1xf32> to vector<8x32xf32>
    %92 = arith.mulf %79, %91 : vector<8x32xf32>
    %93 = vector.broadcast %90 : vector<8x1xf32> to vector<8x32xf32>
    %94 = arith.mulf %77, %93 : vector<8x32xf32>
    %95 = arith.index_cast %c2_i32 : i32 to index
    %c0_39 = arith.constant 0 : index
    %c0_40 = arith.constant 0 : index
    %96 = vector.load %arg11[%95, %c0_39, %c0_40] : memref<8x8x128xf32, #tpu.memory_space<vmem>>, vector<1x8x128xf32>
    %97 = vector.shape_cast %96 : vector<1x8x128xf32> to vector<8x128xf32>
    %cst_41 = arith.constant dense<0.000000e+00> : vector<8x128xf32>
    %98 = tpu.matmul %92, %3, %cst_41 {dimension_numbers = #tpu.dot_dimension_numbers<[1], [0], [0], [1], [0, 0, 1, 1], [], []>} : vector<8x32xf32>, vector<32x128xf32>, vector<8x128xf32> -> vector<8x128xf32>
    %99 = arith.addf %97, %98 : vector<8x128xf32>
    %100 = vector.extract_strided_slice %99 {offsets = [0, 0], sizes = [8, 96], strides = [1, 1]} : vector<8x128xf32> to vector<8x96xf32>
    %101 = arith.negf %100 : vector<8x96xf32>
    %102 = math.exp %101 : vector<8x96xf32>
    %cst_42 = arith.constant 1.000000e+00 : f32
    %103 = vector.broadcast %cst_42 : f32 to vector<8x96xf32>
    %104 = arith.addf %103, %102 : vector<8x96xf32>
    %105 = arith.divf %103, %104 : vector<8x96xf32>
    %106 = vector.extract_strided_slice %105 {offsets = [0, 0], sizes = [8, 32], strides = [1, 1]} : vector<8x96xf32> to vector<8x32xf32>
    %107 = vector.extract_strided_slice %105 {offsets = [0, 32], sizes = [8, 32], strides = [1, 1]} : vector<8x96xf32> to vector<8x32xf32>
    %108 = vector.extract_strided_slice %105 {offsets = [0, 64], sizes = [8, 32], strides = [1, 1]} : vector<8x96xf32> to vector<8x32xf32>
    %109 = vector.extract_strided_slice %99 {offsets = [0, 96], sizes = [8, 32], strides = [1, 1]} : vector<8x128xf32> to vector<8x32xf32>
    %110 = math.tanh %109 : vector<8x32xf32>
    %111 = arith.mulf %107, %94 : vector<8x32xf32>
    %112 = arith.mulf %106, %110 : vector<8x32xf32>
    %113 = arith.addf %111, %112 : vector<8x32xf32>
    %114 = math.tanh %113 : vector<8x32xf32>
    %115 = arith.mulf %108, %114 : vector<8x32xf32>
    %116 = vector.broadcast %4 : vector<1x32xf32> to vector<8x32xf32>
    %117 = arith.mulf %115, %116 : vector<8x32xf32>
    %cst_43 = arith.constant dense<0.000000e+00> : vector<8xf32>
    %118 = vector.multi_reduction <add>, %117, %cst_43 [1] : vector<8x32xf32> to vector<8xf32>
    %119 = vector.shape_cast %118 : vector<8xf32> to vector<1x8xf32>
    %120 = arith.index_cast %c2_i32 : i32 to index
    %c0_44 = arith.constant 0 : index
    %c0_45 = arith.constant 0 : index
    %121 = vector.load %arg12[%120, %c0_44, %c0_45] : memref<8x1x8xf32, #tpu.memory_space<vmem>>, vector<1x1x8xf32>
    %122 = vector.shape_cast %121 : vector<1x1x8xf32> to vector<1x8xf32>
    %123 = vector.shape_cast %119 : vector<1x8xf32> to vector<1x1x8xf32>
    tpu.vector_store %arg12[%120, %c0_44, %c0_45], %123 {strides = array<i32>} : memref<8x1x8xf32, #tpu.memory_space<vmem>>, vector<1x1x8xf32>,
    %c3_i32 = arith.constant 3 : i32
    %124 = arith.index_cast %c3_i32 : i32 to index
    %c0_46 = arith.constant 0 : index
    %c0_47 = arith.constant 0 : index
    %125 = vector.load %arg3[%124, %c0_46, %c0_47] : memref<8x8x1xf32, #tpu.memory_space<vmem>>, vector<1x8x1xf32>
    %126 = vector.shape_cast %125 : vector<1x8x1xf32> to vector<8x1xf32>
    %127 = vector.broadcast %126 : vector<8x1xf32> to vector<8x32xf32>
    %128 = arith.mulf %115, %127 : vector<8x32xf32>
    %129 = vector.broadcast %126 : vector<8x1xf32> to vector<8x32xf32>
    %130 = arith.mulf %113, %129 : vector<8x32xf32>
    %131 = arith.index_cast %c3_i32 : i32 to index
    %c0_48 = arith.constant 0 : index
    %c0_49 = arith.constant 0 : index
    %132 = vector.load %arg11[%131, %c0_48, %c0_49] : memref<8x8x128xf32, #tpu.memory_space<vmem>>, vector<1x8x128xf32>
    %133 = vector.shape_cast %132 : vector<1x8x128xf32> to vector<8x128xf32>
    %cst_50 = arith.constant dense<0.000000e+00> : vector<8x128xf32>
    %134 = tpu.matmul %128, %3, %cst_50 {dimension_numbers = #tpu.dot_dimension_numbers<[1], [0], [0], [1], [0, 0, 1, 1], [], []>} : vector<8x32xf32>, vector<32x128xf32>, vector<8x128xf32> -> vector<8x128xf32>
    %135 = arith.addf %133, %134 : vector<8x128xf32>
    %136 = vector.extract_strided_slice %135 {offsets = [0, 0], sizes = [8, 96], strides = [1, 1]} : vector<8x128xf32> to vector<8x96xf32>
    %137 = arith.negf %136 : vector<8x96xf32>
    %138 = math.exp %137 : vector<8x96xf32>
    %cst_51 = arith.constant 1.000000e+00 : f32
    %139 = vector.broadcast %cst_51 : f32 to vector<8x96xf32>
    %140 = arith.addf %139, %138 : vector<8x96xf32>
    %141 = arith.divf %139, %140 : vector<8x96xf32>
    %142 = vector.extract_strided_slice %141 {offsets = [0, 0], sizes = [8, 32], strides = [1, 1]} : vector<8x96xf32> to vector<8x32xf32>
    %143 = vector.extract_strided_slice %141 {offsets = [0, 32], sizes = [8, 32], strides = [1, 1]} : vector<8x96xf32> to vector<8x32xf32>
    %144 = vector.extract_strided_slice %141 {offsets = [0, 64], sizes = [8, 32], strides = [1, 1]} : vector<8x96xf32> to vector<8x32xf32>
    %145 = vector.extract_strided_slice %135 {offsets = [0, 96], sizes = [8, 32], strides = [1, 1]} : vector<8x128xf32> to vector<8x32xf32>
    %146 = math.tanh %145 : vector<8x32xf32>
    %147 = arith.mulf %143, %130 : vector<8x32xf32>
    %148 = arith.mulf %142, %146 : vector<8x32xf32>
    %149 = arith.addf %147, %148 : vector<8x32xf32>
    %150 = math.tanh %149 : vector<8x32xf32>
    %151 = arith.mulf %144, %150 : vector<8x32xf32>
    %152 = vector.broadcast %4 : vector<1x32xf32> to vector<8x32xf32>
    %153 = arith.mulf %151, %152 : vector<8x32xf32>
    %cst_52 = arith.constant dense<0.000000e+00> : vector<8xf32>
    %154 = vector.multi_reduction <add>, %153, %cst_52 [1] : vector<8x32xf32> to vector<8xf32>
    %155 = vector.shape_cast %154 : vector<8xf32> to vector<1x8xf32>
    %156 = arith.index_cast %c3_i32 : i32 to index
    %c0_53 = arith.constant 0 : index
    %c0_54 = arith.constant 0 : index
    %157 = vector.load %arg12[%156, %c0_53, %c0_54] : memref<8x1x8xf32, #tpu.memory_space<vmem>>, vector<1x1x8xf32>
    %158 = vector.shape_cast %157 : vector<1x1x8xf32> to vector<1x8xf32>
    %159 = vector.shape_cast %155 : vector<1x8xf32> to vector<1x1x8xf32>
    tpu.vector_store %arg12[%156, %c0_53, %c0_54], %159 {strides = array<i32>} : memref<8x1x8xf32, #tpu.memory_space<vmem>>, vector<1x1x8xf32>,
    %c4_i32 = arith.constant 4 : i32
    %160 = arith.index_cast %c4_i32 : i32 to index
    %c0_55 = arith.constant 0 : index
    %c0_56 = arith.constant 0 : index
    %161 = vector.load %arg3[%160, %c0_55, %c0_56] : memref<8x8x1xf32, #tpu.memory_space<vmem>>, vector<1x8x1xf32>
    %162 = vector.shape_cast %161 : vector<1x8x1xf32> to vector<8x1xf32>
    %163 = vector.broadcast %162 : vector<8x1xf32> to vector<8x32xf32>
    %164 = arith.mulf %151, %163 : vector<8x32xf32>
    %165 = vector.broadcast %162 : vector<8x1xf32> to vector<8x32xf32>
    %166 = arith.mulf %149, %165 : vector<8x32xf32>
    %167 = arith.index_cast %c4_i32 : i32 to index
    %c0_57 = arith.constant 0 : index
    %c0_58 = arith.constant 0 : index
    %168 = vector.load %arg11[%167, %c0_57, %c0_58] : memref<8x8x128xf32, #tpu.memory_space<vmem>>, vector<1x8x128xf32>
    %169 = vector.shape_cast %168 : vector<1x8x128xf32> to vector<8x128xf32>
    %cst_59 = arith.constant dense<0.000000e+00> : vector<8x128xf32>
    %170 = tpu.matmul %164, %3, %cst_59 {dimension_numbers = #tpu.dot_dimension_numbers<[1], [0], [0], [1], [0, 0, 1, 1], [], []>} : vector<8x32xf32>, vector<32x128xf32>, vector<8x128xf32> -> vector<8x128xf32>
    %171 = arith.addf %169, %170 : vector<8x128xf32>
    %172 = vector.extract_strided_slice %171 {offsets = [0, 0], sizes = [8, 96], strides = [1, 1]} : vector<8x128xf32> to vector<8x96xf32>
    %173 = arith.negf %172 : vector<8x96xf32>
    %174 = math.exp %173 : vector<8x96xf32>
    %cst_60 = arith.constant 1.000000e+00 : f32
    %175 = vector.broadcast %cst_60 : f32 to vector<8x96xf32>
    %176 = arith.addf %175, %174 : vector<8x96xf32>
    %177 = arith.divf %175, %176 : vector<8x96xf32>
    %178 = vector.extract_strided_slice %177 {offsets = [0, 0], sizes = [8, 32], strides = [1, 1]} : vector<8x96xf32> to vector<8x32xf32>
    %179 = vector.extract_strided_slice %177 {offsets = [0, 32], sizes = [8, 32], strides = [1, 1]} : vector<8x96xf32> to vector<8x32xf32>
    %180 = vector.extract_strided_slice %177 {offsets = [0, 64], sizes = [8, 32], strides = [1, 1]} : vector<8x96xf32> to vector<8x32xf32>
    %181 = vector.extract_strided_slice %171 {offsets = [0, 96], sizes = [8, 32], strides = [1, 1]} : vector<8x128xf32> to vector<8x32xf32>
    %182 = math.tanh %181 : vector<8x32xf32>
    %183 = arith.mulf %179, %166 : vector<8x32xf32>
    %184 = arith.mulf %178, %182 : vector<8x32xf32>
    %185 = arith.addf %183, %184 : vector<8x32xf32>
    %186 = math.tanh %185 : vector<8x32xf32>
    %187 = arith.mulf %180, %186 : vector<8x32xf32>
    %188 = vector.broadcast %4 : vector<1x32xf32> to vector<8x32xf32>
    %189 = arith.mulf %187, %188 : vector<8x32xf32>
    %cst_61 = arith.constant dense<0.000000e+00> : vector<8xf32>
    %190 = vector.multi_reduction <add>, %189, %cst_61 [1] : vector<8x32xf32> to vector<8xf32>
    %191 = vector.shape_cast %190 : vector<8xf32> to vector<1x8xf32>
    %192 = arith.index_cast %c4_i32 : i32 to index
    %c0_62 = arith.constant 0 : index
    %c0_63 = arith.constant 0 : index
    %193 = vector.load %arg12[%192, %c0_62, %c0_63] : memref<8x1x8xf32, #tpu.memory_space<vmem>>, vector<1x1x8xf32>
    %194 = vector.shape_cast %193 : vector<1x1x8xf32> to vector<1x8xf32>
    %195 = vector.shape_cast %191 : vector<1x8xf32> to vector<1x1x8xf32>
    tpu.vector_store %arg12[%192, %c0_62, %c0_63], %195 {strides = array<i32>} : memref<8x1x8xf32, #tpu.memory_space<vmem>>, vector<1x1x8xf32>,
    %c5_i32 = arith.constant 5 : i32
    %196 = arith.index_cast %c5_i32 : i32 to index
    %c0_64 = arith.constant 0 : index
    %c0_65 = arith.constant 0 : index
    %197 = vector.load %arg3[%196, %c0_64, %c0_65] : memref<8x8x1xf32, #tpu.memory_space<vmem>>, vector<1x8x1xf32>
    %198 = vector.shape_cast %197 : vector<1x8x1xf32> to vector<8x1xf32>
    %199 = vector.broadcast %198 : vector<8x1xf32> to vector<8x32xf32>
    %200 = arith.mulf %187, %199 : vector<8x32xf32>
    %201 = vector.broadcast %198 : vector<8x1xf32> to vector<8x32xf32>
    %202 = arith.mulf %185, %201 : vector<8x32xf32>
    %203 = arith.index_cast %c5_i32 : i32 to index
    %c0_66 = arith.constant 0 : index
    %c0_67 = arith.constant 0 : index
    %204 = vector.load %arg11[%203, %c0_66, %c0_67] : memref<8x8x128xf32, #tpu.memory_space<vmem>>, vector<1x8x128xf32>
    %205 = vector.shape_cast %204 : vector<1x8x128xf32> to vector<8x128xf32>
    %cst_68 = arith.constant dense<0.000000e+00> : vector<8x128xf32>
    %206 = tpu.matmul %200, %3, %cst_68 {dimension_numbers = #tpu.dot_dimension_numbers<[1], [0], [0], [1], [0, 0, 1, 1], [], []>} : vector<8x32xf32>, vector<32x128xf32>, vector<8x128xf32> -> vector<8x128xf32>
    %207 = arith.addf %205, %206 : vector<8x128xf32>
    %208 = vector.extract_strided_slice %207 {offsets = [0, 0], sizes = [8, 96], strides = [1, 1]} : vector<8x128xf32> to vector<8x96xf32>
    %209 = arith.negf %208 : vector<8x96xf32>
    %210 = math.exp %209 : vector<8x96xf32>
    %cst_69 = arith.constant 1.000000e+00 : f32
    %211 = vector.broadcast %cst_69 : f32 to vector<8x96xf32>
    %212 = arith.addf %211, %210 : vector<8x96xf32>
    %213 = arith.divf %211, %212 : vector<8x96xf32>
    %214 = vector.extract_strided_slice %213 {offsets = [0, 0], sizes = [8, 32], strides = [1, 1]} : vector<8x96xf32> to vector<8x32xf32>
    %215 = vector.extract_strided_slice %213 {offsets = [0, 32], sizes = [8, 32], strides = [1, 1]} : vector<8x96xf32> to vector<8x32xf32>
    %216 = vector.extract_strided_slice %213 {offsets = [0, 64], sizes = [8, 32], strides = [1, 1]} : vector<8x96xf32> to vector<8x32xf32>
    %217 = vector.extract_strided_slice %207 {offsets = [0, 96], sizes = [8, 32], strides = [1, 1]} : vector<8x128xf32> to vector<8x32xf32>
    %218 = math.tanh %217 : vector<8x32xf32>
    %219 = arith.mulf %215, %202 : vector<8x32xf32>
    %220 = arith.mulf %214, %218 : vector<8x32xf32>
    %221 = arith.addf %219, %220 : vector<8x32xf32>
    %222 = math.tanh %221 : vector<8x32xf32>
    %223 = arith.mulf %216, %222 : vector<8x32xf32>
    %224 = vector.broadcast %4 : vector<1x32xf32> to vector<8x32xf32>
    %225 = arith.mulf %223, %224 : vector<8x32xf32>
    %cst_70 = arith.constant dense<0.000000e+00> : vector<8xf32>
    %226 = vector.multi_reduction <add>, %225, %cst_70 [1] : vector<8x32xf32> to vector<8xf32>
    %227 = vector.shape_cast %226 : vector<8xf32> to vector<1x8xf32>
    %228 = arith.index_cast %c5_i32 : i32 to index
    %c0_71 = arith.constant 0 : index
    %c0_72 = arith.constant 0 : index
    %229 = vector.load %arg12[%228, %c0_71, %c0_72] : memref<8x1x8xf32, #tpu.memory_space<vmem>>, vector<1x1x8xf32>
    %230 = vector.shape_cast %229 : vector<1x1x8xf32> to vector<1x8xf32>
    %231 = vector.shape_cast %227 : vector<1x8xf32> to vector<1x1x8xf32>
    tpu.vector_store %arg12[%228, %c0_71, %c0_72], %231 {strides = array<i32>} : memref<8x1x8xf32, #tpu.memory_space<vmem>>, vector<1x1x8xf32>,
    %c6_i32 = arith.constant 6 : i32
    %232 = arith.index_cast %c6_i32 : i32 to index
    %c0_73 = arith.constant 0 : index
    %c0_74 = arith.constant 0 : index
    %233 = vector.load %arg3[%232, %c0_73, %c0_74] : memref<8x8x1xf32, #tpu.memory_space<vmem>>, vector<1x8x1xf32>
    %234 = vector.shape_cast %233 : vector<1x8x1xf32> to vector<8x1xf32>
    %235 = vector.broadcast %234 : vector<8x1xf32> to vector<8x32xf32>
    %236 = arith.mulf %223, %235 : vector<8x32xf32>
    %237 = vector.broadcast %234 : vector<8x1xf32> to vector<8x32xf32>
    %238 = arith.mulf %221, %237 : vector<8x32xf32>
    %239 = arith.index_cast %c6_i32 : i32 to index
    %c0_75 = arith.constant 0 : index
    %c0_76 = arith.constant 0 : index
    %240 = vector.load %arg11[%239, %c0_75, %c0_76] : memref<8x8x128xf32, #tpu.memory_space<vmem>>, vector<1x8x128xf32>
    %241 = vector.shape_cast %240 : vector<1x8x128xf32> to vector<8x128xf32>
    %cst_77 = arith.constant dense<0.000000e+00> : vector<8x128xf32>
    %242 = tpu.matmul %236, %3, %cst_77 {dimension_numbers = #tpu.dot_dimension_numbers<[1], [0], [0], [1], [0, 0, 1, 1], [], []>} : vector<8x32xf32>, vector<32x128xf32>, vector<8x128xf32> -> vector<8x128xf32>
    %243 = arith.addf %241, %242 : vector<8x128xf32>
    %244 = vector.extract_strided_slice %243 {offsets = [0, 0], sizes = [8, 96], strides = [1, 1]} : vector<8x128xf32> to vector<8x96xf32>
    %245 = arith.negf %244 : vector<8x96xf32>
    %246 = math.exp %245 : vector<8x96xf32>
    %cst_78 = arith.constant 1.000000e+00 : f32
    %247 = vector.broadcast %cst_78 : f32 to vector<8x96xf32>
    %248 = arith.addf %247, %246 : vector<8x96xf32>
    %249 = arith.divf %247, %248 : vector<8x96xf32>
    %250 = vector.extract_strided_slice %249 {offsets = [0, 0], sizes = [8, 32], strides = [1, 1]} : vector<8x96xf32> to vector<8x32xf32>
    %251 = vector.extract_strided_slice %249 {offsets = [0, 32], sizes = [8, 32], strides = [1, 1]} : vector<8x96xf32> to vector<8x32xf32>
    %252 = vector.extract_strided_slice %249 {offsets = [0, 64], sizes = [8, 32], strides = [1, 1]} : vector<8x96xf32> to vector<8x32xf32>
    %253 = vector.extract_strided_slice %243 {offsets = [0, 96], sizes = [8, 32], strides = [1, 1]} : vector<8x128xf32> to vector<8x32xf32>
    %254 = math.tanh %253 : vector<8x32xf32>
    %255 = arith.mulf %251, %238 : vector<8x32xf32>
    %256 = arith.mulf %250, %254 : vector<8x32xf32>
    %257 = arith.addf %255, %256 : vector<8x32xf32>
    %258 = math.tanh %257 : vector<8x32xf32>
    %259 = arith.mulf %252, %258 : vector<8x32xf32>
    %260 = vector.broadcast %4 : vector<1x32xf32> to vector<8x32xf32>
    %261 = arith.mulf %259, %260 : vector<8x32xf32>
    %cst_79 = arith.constant dense<0.000000e+00> : vector<8xf32>
    %262 = vector.multi_reduction <add>, %261, %cst_79 [1] : vector<8x32xf32> to vector<8xf32>
    %263 = vector.shape_cast %262 : vector<8xf32> to vector<1x8xf32>
    %264 = arith.index_cast %c6_i32 : i32 to index
    %c0_80 = arith.constant 0 : index
    %c0_81 = arith.constant 0 : index
    %265 = vector.load %arg12[%264, %c0_80, %c0_81] : memref<8x1x8xf32, #tpu.memory_space<vmem>>, vector<1x1x8xf32>
    %266 = vector.shape_cast %265 : vector<1x1x8xf32> to vector<1x8xf32>
    %267 = vector.shape_cast %263 : vector<1x8xf32> to vector<1x1x8xf32>
    tpu.vector_store %arg12[%264, %c0_80, %c0_81], %267 {strides = array<i32>} : memref<8x1x8xf32, #tpu.memory_space<vmem>>, vector<1x1x8xf32>,
    %c7_i32 = arith.constant 7 : i32
    %268 = arith.index_cast %c7_i32 : i32 to index
    %c0_82 = arith.constant 0 : index
    %c0_83 = arith.constant 0 : index
    %269 = vector.load %arg3[%268, %c0_82, %c0_83] : memref<8x8x1xf32, #tpu.memory_space<vmem>>, vector<1x8x1xf32>
    %270 = vector.shape_cast %269 : vector<1x8x1xf32> to vector<8x1xf32>
    %271 = vector.broadcast %270 : vector<8x1xf32> to vector<8x32xf32>
    %272 = arith.mulf %259, %271 : vector<8x32xf32>
    %273 = vector.broadcast %270 : vector<8x1xf32> to vector<8x32xf32>
    %274 = arith.mulf %257, %273 : vector<8x32xf32>
    %275 = arith.index_cast %c7_i32 : i32 to index
    %c0_84 = arith.constant 0 : index
    %c0_85 = arith.constant 0 : index
    %276 = vector.load %arg11[%275, %c0_84, %c0_85] : memref<8x8x128xf32, #tpu.memory_space<vmem>>, vector<1x8x128xf32>
    %277 = vector.shape_cast %276 : vector<1x8x128xf32> to vector<8x128xf32>
    %cst_86 = arith.constant dense<0.000000e+00> : vector<8x128xf32>
    %278 = tpu.matmul %272, %3, %cst_86 {dimension_numbers = #tpu.dot_dimension_numbers<[1], [0], [0], [1], [0, 0, 1, 1], [], []>} : vector<8x32xf32>, vector<32x128xf32>, vector<8x128xf32> -> vector<8x128xf32>
    %279 = arith.addf %277, %278 : vector<8x128xf32>
    %280 = vector.extract_strided_slice %279 {offsets = [0, 0], sizes = [8, 96], strides = [1, 1]} : vector<8x128xf32> to vector<8x96xf32>
    %281 = arith.negf %280 : vector<8x96xf32>
    %282 = math.exp %281 : vector<8x96xf32>
    %cst_87 = arith.constant 1.000000e+00 : f32
    %283 = vector.broadcast %cst_87 : f32 to vector<8x96xf32>
    %284 = arith.addf %283, %282 : vector<8x96xf32>
    %285 = arith.divf %283, %284 : vector<8x96xf32>
    %286 = vector.extract_strided_slice %285 {offsets = [0, 0], sizes = [8, 32], strides = [1, 1]} : vector<8x96xf32> to vector<8x32xf32>
    %287 = vector.extract_strided_slice %285 {offsets = [0, 32], sizes = [8, 32], strides = [1, 1]} : vector<8x96xf32> to vector<8x32xf32>
    %288 = vector.extract_strided_slice %285 {offsets = [0, 64], sizes = [8, 32], strides = [1, 1]} : vector<8x96xf32> to vector<8x32xf32>
    %289 = vector.extract_strided_slice %279 {offsets = [0, 96], sizes = [8, 32], strides = [1, 1]} : vector<8x128xf32> to vector<8x32xf32>
    %290 = math.tanh %289 : vector<8x32xf32>
    %291 = arith.mulf %287, %274 : vector<8x32xf32>
    %292 = arith.mulf %286, %290 : vector<8x32xf32>
    %293 = arith.addf %291, %292 : vector<8x32xf32>
    %294 = math.tanh %293 : vector<8x32xf32>
    %295 = arith.mulf %288, %294 : vector<8x32xf32>
    %296 = vector.broadcast %4 : vector<1x32xf32> to vector<8x32xf32>
    %297 = arith.mulf %295, %296 : vector<8x32xf32>
    %cst_88 = arith.constant dense<0.000000e+00> : vector<8xf32>
    %298 = vector.multi_reduction <add>, %297, %cst_88 [1] : vector<8x32xf32> to vector<8xf32>
    %299 = vector.shape_cast %298 : vector<8xf32> to vector<1x8xf32>
    %300 = arith.index_cast %c7_i32 : i32 to index
    %c0_89 = arith.constant 0 : index
    %c0_90 = arith.constant 0 : index
    %301 = vector.load %arg12[%300, %c0_89, %c0_90] : memref<8x1x8xf32, #tpu.memory_space<vmem>>, vector<1x1x8xf32>
    %302 = vector.shape_cast %301 : vector<1x1x8xf32> to vector<1x8xf32>
    %303 = vector.shape_cast %299 : vector<1x8xf32> to vector<1x1x8xf32>
    tpu.vector_store %arg12[%300, %c0_89, %c0_90], %303 {strides = array<i32>} : memref<8x1x8xf32, #tpu.memory_space<vmem>>, vector<1x1x8xf32>,
    %c8_i32 = arith.constant 8 : i32
    %c0_91 = arith.constant 0 : index
    %c0_92 = arith.constant 0 : index
    %304 = vector.load %arg9[%c0_91, %c0_92] : memref<8x32xf32, #tpu.memory_space<vmem>>, vector<8x32xf32>
    tpu.vector_store %arg9[%c0_91, %c0_92], %295 {strides = array<i32>} : memref<8x32xf32, #tpu.memory_space<vmem>>, vector<8x32xf32>,
    %c0_93 = arith.constant 0 : index
    %c0_94 = arith.constant 0 : index
    %305 = vector.load %arg10[%c0_93, %c0_94] : memref<8x32xf32, #tpu.memory_space<vmem>>, vector<8x32xf32>
    tpu.vector_store %arg10[%c0_93, %c0_94], %293 {strides = array<i32>} : memref<8x32xf32, #tpu.memory_space<vmem>>, vector<8x32xf32>,
    %c0_95 = arith.constant 0 : index
    %c0_96 = arith.constant 0 : index
    %c0_97 = arith.constant 0 : index
    %306 = vector.load %arg12[%c0_95, %c0_96, %c0_97] : memref<8x1x8xf32, #tpu.memory_space<vmem>>, vector<8x1x8xf32>
    %307 = vector.shape_cast %306 : vector<8x1x8xf32> to vector<8x8xf32>
    %308 = tpu.transpose %307, [1, 0] : vector<8x8xf32> -> vector<8x8xf32>
    %c0_98 = arith.constant 0 : index
    %c0_99 = arith.constant 0 : index
    %309 = vector.load %arg8[%c0_98, %c0_99] : memref<8x8xf32, #tpu.memory_space<vmem>>, vector<8x8xf32>
    tpu.vector_store %arg8[%c0_98, %c0_99], %308 {strides = array<i32>} : memref<8x8xf32, #tpu.memory_space<vmem>>, vector<8x8xf32>,
    return
  }
  func.func @transform_0(%arg0: i32, %arg1: i32) -> (i32, i32, i32) {
    %c0_i32 = arith.constant 0 : i32
    %c0_i32_0 = arith.constant 0 : i32
    return %arg1, %arg0, %c0_i32 : i32, i32, i32
  }
  func.func @transform_1(%arg0: i32, %arg1: i32) -> (i32, i32, i32) {
    %c0_i32 = arith.constant 0 : i32
    %c0_i32_0 = arith.constant 0 : i32
    return %arg1, %arg0, %c0_i32 : i32, i32, i32
  }
  func.func @transform_2(%arg0: i32, %arg1: i32) -> (i32, i32) {
    %c0_i32 = arith.constant 0 : i32
    %c0_i32_0 = arith.constant 0 : i32
    %c0_i32_1 = arith.constant 0 : i32
    return %c0_i32, %c0_i32_0 : i32, i32
  }
  func.func @transform_3(%arg0: i32, %arg1: i32) -> (i32, i32) {
    %c0_i32 = arith.constant 0 : i32
    %c0_i32_0 = arith.constant 0 : i32
    %c0_i32_1 = arith.constant 0 : i32
    return %c0_i32, %c0_i32_0 : i32, i32
  }
  func.func @transform_4(%arg0: i32, %arg1: i32) -> (i32, i32) {
    %c0_i32 = arith.constant 0 : i32
    %c0_i32_0 = arith.constant 0 : i32
    %c0_i32_1 = arith.constant 0 : i32
    return %c0_i32, %c0_i32_0 : i32, i32
  }
  func.func @transform_5(%arg0: i32, %arg1: i32) -> (i32, i32) {
    %c0_i32 = arith.constant 0 : i32
    %c0_i32_0 = arith.constant 0 : i32
    %c0_i32_1 = arith.constant 0 : i32
    return %c0_i32, %c0_i32_0 : i32, i32
  }
  func.func @transform_6(%arg0: i32, %arg1: i32) -> (i32, i32) {
    %c0_i32 = arith.constant 0 : i32
    return %arg0, %arg1 : i32, i32
  }
}

</mosaic_0001>

<bundles_post_ra>
// kernel: tpu_custom_call.1
= control target key start
LH: loop header
LB: loop body
LE: loop exit
PB: predicated region body
PF: predicated region fallthrough
CT: control target
= control target key end

     0   :  { %11 = vsyncpa [#allocation7], 0  ;;  %s2088_s0 = inlined_call_operand.vmem [shape: f32[8,8,16], index: 0, kind: input, shape index: {}]   ;;  %s2089_s1 = inlined_call_operand.vmem [shape: f32[8,8,1], index: 1, kind: input, shape index: {}]   ;;  %s2090_s2 = inlined_call_operand.hbm [shape: f32[16,128], index: 2, kind: input, shape index: {}]   ;;  %s2091_s3 = inlined_call_operand.hbm [shape: f32[32,128], index: 3, kind: input, shape index: {}]   ;;  %s2092_s4 = inlined_call_operand.vmem [shape: f32[1,128], index: 4, kind: input, shape index: {}]   ;;  %s2093_s5 = inlined_call_operand.vmem [shape: f32[1,32], index: 5, kind: input, shape index: {}]   ;;  %s2094_s6 = inlined_call_operand.hbm [shape: f32[8,8], index: 6, kind: output, shape index: {}]  }
   0x1   :  { %12 = vsyncpa [#allocation10], 0 }
   0x2   :  { %13 = vsyncpa [#allocation8], 0  ;;  %s1764_s21 = smov [#allocation6]   ;;  %s1692_s25 = scalar_lea.hbm %s2090_s2, 256 }
   0x3   :  { %s23_s22 = sshll.u32 %s1764_s21, 4  ;;  %p1693_p0 = scmp.ne.s32.totalorder %s2090_s2, %s1692_s25  ;;  %s24_s22 = int_to_ptr.vmem [resolvable:$true] %s23_s22 }
   0x4   :  { %p1696_p1 = scmp.lt.u32.totalorder %s1692_s25, %s2090_s2 }
   0x6   :  { %p1698_p2 = pnand %p1696_p1, %p1693_p0 }
   0x8   :  { %1701 = shalt.err (!%p1698_p2)
}
   0x9   :  { %s1702_s30 = scalar_lea.vmem %s24_s22, 256  ;;  %p1707_p4 = scmp.lt.s32.totalorder %s24_s22, %s24_s22 }
   0xa   :  { %p1703_p3 = scmp.ne.s32.totalorder %s24_s22, %s1702_s30  ;;  %p1708_p5 = scmp.lt.s32.totalorder %s1702_s30, %s1702_s30 }
   0xc   :  { %p1709_p6 = por %p1708_p5, %p1707_p4 }
   0xe   :  { %p1710_p7 = pnand %p1709_p6, %p1703_p3 }
  0x10   :  { %1713 = shalt.err (!%p1710_p7)
}
  0x11   :  { %s1765_s7 = smov 128   ;;  %s1766_s8 = smov 8  }
  0x12   :  { %29 = dma.hbm_to_vmem [thread:$0]  %s2090_s2, 256, %s24_s22, [#allocation7], %s1765_s7, %s1765_s7, %s1766_s8  }
  0x13   :  { %s1767_s11 = smov [#allocation9]   ;;  %s1714_s15 = scalar_lea.hbm %s2091_s3, 512 }
  0x14   :  { %s35_s12 = sshll.u32 %s1767_s11, 4  ;;  %p1715_p8 = scmp.ne.s32.totalorder %s2091_s3, %s1714_s15  ;;  %s36_s12 = int_to_ptr.vmem [resolvable:$true] %s35_s12 }
  0x15   :  { %p1718_p9 = scmp.lt.u32.totalorder %s1714_s15, %s2091_s3 }
  0x17   :  { %p1720_p10 = pnand %p1718_p9, %p1715_p8 }
  0x19   :  { %1723 = shalt.err (!%p1720_p10)
}
  0x1a   :  { %s1724_s20 = scalar_lea.vmem %s36_s12, 512  ;;  %p1729_p12 = scmp.lt.s32.totalorder %s36_s12, %s36_s12 }
  0x1b   :  { %p1725_p11 = scmp.ne.s32.totalorder %s36_s12, %s1724_s20  ;;  %p1730_p13 = scmp.lt.s32.totalorder %s1724_s20, %s1724_s20 }
  0x1d   :  { %p1731_p0 = por %p1730_p13, %p1729_p12 }
  0x1f   :  { %p1732_p1 = pnand %p1731_p0, %p1725_p11 }
  0x21   :  { %1735 = shalt.err (!%p1732_p1)
}
  0x22   :  { %41 = dma.hbm_to_vmem [thread:$0]  %s2091_s3, 512, %s36_s12, [#allocation10], %s1765_s7, %s1765_s7, %s1766_s8  }
  0x23   :  { %1758 = dma.done.wait [#allocation7], 256  }
  0x24   :  { %1759 = vsyncadd [#allocation7], 4294967040 }
  0x25   :  { %1760 = dma.done.wait [#allocation10], 512  }
  0x26   :  { %1761 = vsyncadd [#allocation10], 4294966784  ;;  %vm56_vm0 = vcmask 261120   ;;  %v1768_v0 = vmov 0   ;;  %v1769_v1 = vmov 0.0|0.0   ;;  %v1770_v2 = vmov 0.0  }
  0x27   :  { %1626 = vset.pattern.permute.xlu0 %v1768_v0  ;;  %1565 = vmatprep.subr.bf16.mxu1 %v1769_v1  ;;  %57 = vst.msk [vmem:[#allocation2] sm:$0xff] %vm56_vm0, %v1770_v2  ;;  %58 = vst.msk [vmem:[#allocation3] sm:$0xff] %vm56_vm0, %v1770_v2  ;;  %vm81_vm1 = vcmask 130048   ;;  %v221_v3 = vld [vmem:[%s2089_s1] sm:$0xff]  ;;  %v72_v4 = vld [vmem:[#allocation6] sm:$0xff]  ;;  %vm1771_vm2 = vmmov 0  }
  0x28   :  { %1627 = vset.pattern.permute.xlu1 %v1768_v0  ;;  %v73_v5 = vld [vmem:[#allocation6 + $0x8] sm:$0xff]  ;;  %224 = vperm.xlu0 %1626, %v221_v3   ;;  %v59_v7 = vld [vmem:[#allocation9] sm:$0xff]  ;;  %v60_v8 = vld [vmem:[#allocation9 + $0x8] sm:$0xff]  ;;  %s1772_s27 = smov 32   ;;  %vm357_vm3 = vcmask 57344   ;;  %vm1356_vm4 = vcmask 64512  }
  0x29   :  { %v1561_v6 = vpack.c.bf16 %v73_v5, %v72_v4  ;;  %v64_v9 = vld [vmem:[%s2088_s0] sm:$0xff]  ;;  %v1847_v10 = vpack.c.bf16 %v60_v8, %v59_v7  ;;  %v61_v11 = vld [vmem:[#allocation9 + $0x10] sm:$0xff]  ;;  %1481 = vmatprep.mubr.msk.f32.mxu1 %vm1771_vm2, %v1770_v2  ;;  %v65_v13 = vld [vmem:[%s2088_s0 + $0x8] sm:$0xff] }
  0x2a   :  { %1461 = vmatprep.mubr.msk.f32.mxu0 %vm81_vm1, %v64_v9  ;;  %v62_v12 = vld [vmem:[#allocation9 + $0x18] sm:$0xff]  ;;  %v1386_v28 = vld [vmem:[%s2089_s1 + $0x8] sm:$0xff]  ;;  %v1389_v50 = vld [vmem:[%s2089_s1 + $0x10] sm:$0xff] }
  0x2b   :  { %1562 = vmatprep.subr.bf16.mxu0 %v1561_v6  ;;  %1567 = vmatpush3.bf16.msra.mxu1 %v1847_v10  ;;  %v1856_v14 = vpack.c.bf16 %v62_v12, %v61_v11  ;;  %v1878_v22 = vld [vmem:[%s2092_s4] ss:$0 sm:$0xff]  ;;  %s1773_s4 = smov 64   ;;  %v66_v61 = vld [vmem:[%s2088_s0 + $0x10] sm:$0xff]  ;;  %v67_v62 = vld [vmem:[%s2088_s0 + $0x18] sm:$0xff] }
  0x2c   :  { %1564 = vmatpush3.bf16.msra.mxu0 %v1561_v6  ;;  %1568 = vmatprep.subr.bf16.mxu1 %v1769_v1  ;;  %v68_v63 = vld [vmem:[%s2088_s0 + $0x20] sm:$0xff]  ;;  %v69_v0 = vld [vmem:[%s2088_s0 + $0x28] sm:$0xff]  ;;  %v70_v3 = vld [vmem:[%s2088_s0 + $0x30] sm:$0xff] }
  0x2d   :  { %1577 = vmatprep.subr.bf16.mxu0 %v1769_v1  ;;  %v71_v4 = vld [vmem:[%s2088_s0 + $0x38] sm:$0xff] }
  0x2e   :  { %v219_v15 = vld [vmem:[#allocation2] sm:$0xff]  ;;  %v220_v16 = vld [vmem:[#allocation3] sm:$0xff] }
  0x2f   :  { %1462 = vmatmul.mubr.msk.f32.vlgmr.msra.gmra.mrb[0].mxu0 %vm81_vm1, %v65_v13  ;;  %1570 = vmatpush3.bf16.msra.mxu1 %v1856_v14 }
  0x30   :  { %1579 = vmatpush3.bf16.msra.mxu0 %v1847_v10  ;;  %1571 = vmatprep.subr.bf16.mxu1 %v1769_v1 }
  0x31   :  { %1580 = vmatprep.subr.bf16.mxu0 %v1769_v1  ;;  %1464 = vmatprep.mubr.msk.f32.mxu0 %vm81_vm1, %v66_v61 }
  0x33   :  { %1465 = vmatmul.mubr.msk.f32.gmra.mrb[2].mxu0 %vm81_vm1, %v67_v62 }
  0x34   :  { %1582 = vmatpush3.bf16.msra.mxu0 %v1856_v14  ;;  %1467 = vmatprep.mubr.msk.f32.mxu0 %vm81_vm1, %v68_v63 }
  0x35   :  { %1589 = vmatprep.subr.bf16.mxu0 %v1769_v1 }
  0x37   :  { %1468 = vmatmul.mubr.msk.f32.gmra.mrb[4].mxu0 %vm81_vm1, %v69_v0 }
  0x38   :  { %1470 = vmatprep.mubr.msk.f32.mxu0 %vm81_vm1, %v70_v3 }
  0x3b   :  { %1471 = vmatmul.mubr.msk.f32.gmra.mrb[6].mxu0 %vm81_vm1, %v71_v4 }
  0x3c   :  { %1503 = vmatprep.mubr.msk.f32.mxu0 %vm1771_vm2, %v1770_v2 }
  0xa7   :  { %v225_v17 = vpop.permute.xlu0 %224 }
  0xa8   :  { %v227_v18 = vmul.f32 %v225_v17, %v219_v15  ;;  %v228_v19 = vmul.f32 %v225_v17, %v220_v16 }
  0xaa   :  { %313 = vrot.lane.b32.xlu1 %v228_v19, %s1772_s27  ;;  %1482 = vmatmul.mubr.msk.f32.vlgmr.msra.gmra.mrb[0].mxu1 %vm56_vm0, %v227_v18 }
  0xab   :  { %1573 = vmatpush3.bf16.msra.mxu1 %v1847_v10  ;;  %1492 = vmatprep.mubr.msk.f32.mxu1 %vm1771_vm2, %v1770_v2 }
  0xac   :  { %1574 = vmatprep.subr.bf16.mxu1 %v1769_v1 }
  0xaf   :  { %1576 = vmatpush3.bf16.msra.mxu1 %v1856_v14 }
  0xb0   :  { %1583 = vmatprep.subr.bf16.mxu1 %v1769_v1 }
 0x102   :  { %v1463_v20 = vpop.f32.mrb[0].mxu0 }
 0x103   :  { %v172_v21 = vpop.f32.mrb[1].mxu0  ;;  %v178_v45 = vadd.f32 %v1463_v20, %v1878_v22 }
 0x104   :  { %v173_v23 = vadd.f32 %v1878_v22, %v172_v21 }
 0x106   :  { %v1466_v11 = vpop.f32.mrb[2].mxu0 }
 0x107   :  { %v182_v12 = vpop.f32.mrb[3].mxu0 }
 0x108   :  { %v183_v19 = vadd.f32 %v1878_v22, %v182_v12 }
 0x10a   :  { %v1935_v13 = vpop.f32.mrb[4].mxu0 }
 0x10b   :  { %v1937_v15 = vpop.f32.mrb[5].mxu0 }
 0x10c   :  { %v193_v3 = vadd.f32 %v1878_v22, %v1937_v15 }
 0x10e   :  { %v1939_v16 = vpop.f32.mrb[6].mxu0 }
 0x10f   :  { %v1941_v17 = vpop.f32.mrb[7].mxu0 }
 0x11c   :  { %v314_v35 = vpop.permute.xlu1 %313 }
 0x17d   :  { %v300_v24 = vpop.f32.mrb[0].mxu1 }
 0x17e   :  { %v304_v25 = vadd.f32 %v300_v24, %v173_v23  ;;  %v1483_v26 = vpop.f32.mrb[1].mxu1 }
 0x180   :  { %1628 = vtanh.f32 %v304_v25  ;;  %v1384_v29 = vmul.f32 -1.442695, %v304_v25  ;;  %v1392_v25 = vld [vmem:[%s2089_s1 + $0x18] sm:$0xff] }
 0x182   :  { %1630 = vpow2.f32 %v1384_v29 }
 0x18a   :  { %v1629_v27 = vpop.eup %1628 }
 0x18b   :  { %318 = vrot.lane.b32.xlu0 %v1629_v27, %s1772_s27 }
 0x18c   :  { %v1631_v30 = vpop.eup %1630 }
 0x18d   :  { %v308_v31 = vadd.f32 1.0, %v1631_v30 }
 0x18f   :  { %363 = vperm.xlu0 %1626, %v1386_v28   ;;  %1632 = vrcp.f32 %v308_v31 }
 0x199   :  { %v1633_v32 = vpop.eup %1632 }
 0x19a   :  { %v316_v36 = vmul.f32 %v1633_v32, %v314_v35 }
 0x1fd   :  { %v319_v33 = vpop.permute.xlu0 %318 }
 0x1fe   :  { %v321_v34 = vmul.f32 %v1633_v32, %v319_v33 }
 0x200   :  { %323 = vrot.lane.b32.xlu1 %v321_v34, %s1772_s27 }
 0x20e   :  { %v364_v42 = vpop.permute.xlu0 %363 }
 0x272   :  { %v324_v37 = vpop.permute.xlu1 %323 }
 0x273   :  { %v326_v38 = vadd.f32 %v324_v37, %v316_v36 }
 0x275   :  { %1634 = vtanh.f32 %v326_v38  ;;  %v367_v57 = vmul.f32 %v364_v42, %v326_v38 }
 0x27f   :  { %v1635_v39 = vpop.eup %1634 }
 0x280   :  { %329 = vrot.lane.b32.xlu1 %v1635_v39, %s1772_s27 }
 0x2f2   :  { %v330_v40 = vpop.permute.xlu1 %329 }
 0x2f3   :  { %v1887_v41 = vmul.f32 %v1633_v32, %v330_v40 }
 0x2f5   :  { %v366_v43 = vmul.f32 %v364_v42, %v1887_v41 }
 0x2f7   :  { %371 = vrot.lane.b32.xlu0 %v366_v43, %s1773_s4  ;;  %v188_v43 = vadd.f32 %v1466_v11, %v1878_v22 }
 0x369   :  { %v372_v44 = vpop.permute.xlu0 %371 }
 0x36a   :  { %1493 = vmatmul.mubr.msk.f32.vlgmr.msra.gmra.mrb[2].mxu1 %vm56_vm0, %v372_v44 }
 0x36b   :  { %1585 = vmatpush3.bf16.msra.mxu1 %v1847_v10  ;;  %1514 = vmatprep.mubr.msk.f32.mxu1 %vm1771_vm2, %v1770_v2 }
 0x36c   :  { %1586 = vmatprep.subr.bf16.mxu1 %v1769_v1 }
 0x36f   :  { %1588 = vmatpush3.bf16.msra.mxu1 %v1856_v14 }
 0x370   :  { %1595 = vmatprep.subr.bf16.mxu1 %v1769_v1 }
 0x43d   :  { %v441_v46 = vpop.f32.mrb[2].mxu1 }
 0x43e   :  { %v445_v47 = vadd.f32 %v441_v46, %v178_v45  ;;  %v1494_v48 = vpop.f32.mrb[3].mxu1 }
 0x43f   :  { %v1395_v48 = vld [vmem:[%s2089_s1 + $0x20] sm:$0xff] }
 0x440   :  { %1636 = vtanh.f32 %v445_v47  ;;  %v1388_v51 = vmul.f32 -1.442695, %v445_v47 }
 0x442   :  { %1638 = vpow2.f32 %v1388_v51 }
 0x44a   :  { %v1637_v49 = vpop.eup %1636 }
 0x44b   :  { %455 = vrot.lane.b32.xlu1 %v1637_v49, %s1772_s27 }
 0x44c   :  { %v1639_v52 = vpop.eup %1638 }
 0x44d   :  { %v449_v53 = vadd.f32 1.0, %v1639_v52 }
 0x44f   :  { %490 = vperm.xlu1 %1627, %v1389_v50   ;;  %1640 = vrcp.f32 %v449_v53 }
 0x459   :  { %v1641_v54 = vpop.eup %1640 }
 0x45a   :  { %v453_v58 = vmul.f32 %v1641_v54, %v367_v57 }
 0x4bd   :  { %v456_v55 = vpop.permute.xlu1 %455 }
 0x4be   :  { %v458_v56 = vmul.f32 %v1641_v54, %v456_v55 }
 0x4c0   :  { %460 = vrot.lane.b32.xlu0 %v458_v56, %s1772_s27 }
 0x4ce   :  { %v491_v8 = vpop.permute.xlu1 %490 }
 0x532   :  { %v461_v59 = vpop.permute.xlu0 %460 }
 0x533   :  { %v463_v60 = vadd.f32 %v461_v59, %v453_v58 }
 0x535   :  { %1642 = vtanh.f32 %v463_v60  ;;  %v494_v32 = vmul.f32 %v491_v8, %v463_v60 }
 0x53f   :  { %v1643_v5 = vpop.eup %1642 }
 0x540   :  { %466 = vrot.lane.b32.xlu0 %v1643_v5, %s1772_s27 }
 0x5b2   :  { %v467_v6 = vpop.permute.xlu0 %466 }
 0x5b3   :  { %v1931_v7 = vmul.f32 %v1641_v54, %v467_v6 }
 0x5b5   :  { %v493_v9 = vmul.f32 %v491_v8, %v1931_v7 }
 0x5b7   :  { %498 = vrot.lane.b32.xlu1 %v493_v9, %s1773_s4  ;;  %v1398_v9 = vld [vmem:[%s2089_s1 + $0x28] sm:$0xff] }
 0x629   :  { %v499_v18 = vpop.permute.xlu1 %498 }
 0x62a   :  { %1504 = vmatmul.mubr.msk.f32.vlgmr.msra.gmra.mrb[8].mxu0 %vm56_vm0, %v499_v18 }
 0x62b   :  { %1591 = vmatpush3.bf16.msra.mxu0 %v1847_v10  ;;  %1525 = vmatprep.mubr.msk.f32.mxu0 %vm1771_vm2, %v1770_v2 }
 0x62c   :  { %1592 = vmatprep.subr.bf16.mxu0 %v1769_v1 }
 0x62f   :  { %1594 = vmatpush3.bf16.msra.mxu0 %v1856_v14 }
 0x630   :  { %1601 = vmatprep.subr.bf16.mxu0 %v1769_v1 }
 0x6fd   :  { %v568_v20 = vpop.f32.mrb[8].mxu0 }
 0x6fe   :  { %v572_v21 = vadd.f32 %v568_v20, %v183_v19  ;;  %v1505_v23 = vpop.f32.mrb[9].mxu0 }
 0x700   :  { %1644 = vtanh.f32 %v572_v21  ;;  %v1391_v26 = vmul.f32 -1.442695, %v572_v21 }
 0x702   :  { %1646 = vpow2.f32 %v1391_v26 }
 0x70a   :  { %v1645_v24 = vpop.eup %1644 }
 0x70b   :  { %582 = vrot.lane.b32.xlu0 %v1645_v24, %s1772_s27 }
 0x70c   :  { %v1647_v27 = vpop.eup %1646 }
 0x70d   :  { %v576_v28 = vadd.f32 1.0, %v1647_v27 }
 0x70f   :  { %617 = vperm.xlu0 %1626, %v1392_v25   ;;  %1648 = vrcp.f32 %v576_v28 }
 0x719   :  { %v1649_v29 = vpop.eup %1648 }
 0x71a   :  { %v580_v33 = vmul.f32 %v1649_v29, %v494_v32  ;;  %v198_v32 = vadd.f32 %v1935_v13, %v1878_v22 }
 0x77d   :  { %v583_v30 = vpop.permute.xlu0 %582 }
 0x77e   :  { %v585_v31 = vmul.f32 %v1649_v29, %v583_v30 }
 0x780   :  { %587 = vrot.lane.b32.xlu1 %v585_v31, %s1772_s27 }
 0x78e   :  { %v618_v39 = vpop.permute.xlu0 %617 }
 0x7f2   :  { %v588_v34 = vpop.permute.xlu1 %587 }
 0x7f3   :  { %v590_v35 = vadd.f32 %v588_v34, %v580_v33 }
 0x7f5   :  { %1650 = vtanh.f32 %v590_v35  ;;  %v621_v55 = vmul.f32 %v618_v39, %v590_v35 }
 0x7ff   :  { %v1651_v36 = vpop.eup %1650 }
 0x800   :  { %593 = vrot.lane.b32.xlu1 %v1651_v36, %s1772_s27 }
 0x872   :  { %v594_v37 = vpop.permute.xlu1 %593 }
 0x873   :  { %v1957_v38 = vmul.f32 %v1649_v29, %v594_v37 }
 0x875   :  { %v620_v40 = vmul.f32 %v618_v39, %v1957_v38 }
 0x877   :  { %625 = vrot.lane.b32.xlu0 %v620_v40, %s1773_s4 }
 0x8e9   :  { %v626_v42 = vpop.permute.xlu0 %625 }
 0x8ea   :  { %1515 = vmatmul.mubr.msk.f32.vlgmr.msra.gmra.mrb[4].mxu1 %vm56_vm0, %v626_v42 }
 0x8eb   :  { %1597 = vmatpush3.bf16.msra.mxu1 %v1847_v10  ;;  %1536 = vmatprep.mubr.msk.f32.mxu1 %vm1771_vm2, %v1770_v2 }
 0x8ec   :  { %1598 = vmatprep.subr.bf16.mxu1 %v1769_v1 }
 0x8ef   :  { %1600 = vmatpush3.bf16.msra.mxu1 %v1856_v14 }
 0x8f0   :  { %1607 = vmatprep.subr.bf16.mxu1 %v1769_v1 }
 0x9bd   :  { %v695_v44 = vpop.f32.mrb[4].mxu1 }
 0x9be   :  { %v699_v45 = vadd.f32 %v695_v44, %v188_v43  ;;  %v1516_v46 = vpop.f32.mrb[5].mxu1 }
 0x9c0   :  { %1652 = vtanh.f32 %v699_v45  ;;  %v1394_v49 = vmul.f32 -1.442695, %v699_v45 }
 0x9c2   :  { %1654 = vpow2.f32 %v1394_v49 }
 0x9ca   :  { %v1653_v47 = vpop.eup %1652 }
 0x9cb   :  { %709 = vrot.lane.b32.xlu1 %v1653_v47, %s1772_s27 }
 0x9cc   :  { %v1655_v50 = vpop.eup %1654 }
 0x9cd   :  { %v703_v51 = vadd.f32 1.0, %v1655_v50 }
 0x9cf   :  { %744 = vperm.xlu1 %1627, %v1395_v48   ;;  %1656 = vrcp.f32 %v703_v51  ;;  %v203_v51 = vadd.f32 %v1878_v22, %v1941_v17 }
 0x9d9   :  { %v1657_v52 = vpop.eup %1656 }
 0x9da   :  { %v707_v56 = vmul.f32 %v1657_v52, %v621_v55 }
 0xa3d   :  { %v710_v53 = vpop.permute.xlu1 %709 }
 0xa3e   :  { %v712_v54 = vmul.f32 %v1657_v52, %v710_v53 }
 0xa40   :  { %714 = vrot.lane.b32.xlu0 %v712_v54, %s1772_s27 }
 0xa4e   :  { %v745_v62 = vpop.permute.xlu1 %744 }
 0xab2   :  { %v715_v57 = vpop.permute.xlu0 %714 }
 0xab3   :  { %v717_v58 = vadd.f32 %v715_v57, %v707_v56  ;;  %v1404_v56 = vld [vmem:[%s2089_s1 + $0x38] sm:$0xff] }
 0xab5   :  { %1658 = vtanh.f32 %v717_v58  ;;  %v748_v21 = vmul.f32 %v745_v62, %v717_v58 }
 0xabf   :  { %v1659_v59 = vpop.eup %1658 }
 0xac0   :  { %720 = vrot.lane.b32.xlu0 %v1659_v59, %s1772_s27 }
 0xb32   :  { %v721_v60 = vpop.permute.xlu0 %720 }
 0xb33   :  { %v1975_v61 = vmul.f32 %v1657_v52, %v721_v60 }
 0xb35   :  { %v747_v63 = vmul.f32 %v745_v62, %v1975_v61 }
 0xb37   :  { %752 = vrot.lane.b32.xlu1 %v747_v63, %s1773_s4 }
 0xba9   :  { %v753_v0 = vpop.permute.xlu1 %752 }
 0xbaa   :  { %1526 = vmatmul.mubr.msk.f32.vlgmr.msra.gmra.mrb[10].mxu0 %vm56_vm0, %v753_v0 }
 0xbab   :  { %1603 = vmatpush3.bf16.msra.mxu0 %v1847_v10  ;;  %1547 = vmatprep.mubr.msk.f32.mxu0 %vm1771_vm2, %v1770_v2 }
 0xbac   :  { %1604 = vmatprep.subr.bf16.mxu0 %v1769_v1 }
 0xbaf   :  { %1606 = vmatpush3.bf16.msra.mxu0 %v1856_v14 }
 0xc7d   :  { %v822_v4 = vpop.f32.mrb[10].mxu0 }
 0xc7e   :  { %v826_v5 = vadd.f32 %v822_v4, %v193_v3  ;;  %v1527_v6 = vpop.f32.mrb[11].mxu0 }
 0xc80   :  { %1660 = vtanh.f32 %v826_v5  ;;  %v1397_v11 = vmul.f32 -1.442695, %v826_v5 }
 0xc82   :  { %1662 = vpow2.f32 %v1397_v11 }
 0xc8a   :  { %v1661_v8 = vpop.eup %1660 }
 0xc8b   :  { %836 = vrot.lane.b32.xlu0 %v1661_v8, %s1772_s27 }
 0xc8c   :  { %v1663_v12 = vpop.eup %1662 }
 0xc8d   :  { %v830_v18 = vadd.f32 1.0, %v1663_v12 }
 0xc8f   :  { %871 = vperm.xlu0 %1626, %v1398_v9   ;;  %1664 = vrcp.f32 %v830_v18  ;;  %v208_v18 = vadd.f32 %v1939_v16, %v1878_v22 }
 0xc99   :  { %v1665_v19 = vpop.eup %1664 }
 0xc9a   :  { %v834_v23 = vmul.f32 %v1665_v19, %v748_v21 }
 0xcfd   :  { %v837_v20 = vpop.permute.xlu0 %836 }
 0xcfe   :  { %v839_v15 = vmul.f32 %v1665_v19, %v837_v20 }
 0xd00   :  { %841 = vrot.lane.b32.xlu1 %v839_v15, %s1772_s27 }
 0xd0e   :  { %v872_v29 = vpop.permute.xlu0 %871 }
 0xd72   :  { %v842_v24 = vpop.permute.xlu1 %841 }
 0xd73   :  { %v844_v25 = vadd.f32 %v842_v24, %v834_v23  ;;  %v1385_v23 = vld [vmem:[%s2093_s5] ss:$0 sm:$0xff]  ;;  %s1774_s5 = smov 96  }
 0xd75   :  { %1666 = vtanh.f32 %v844_v25  ;;  %v875_v40 = vmul.f32 %v872_v29, %v844_v25 }
 0xd7f   :  { %v1667_v26 = vpop.eup %1666 }
 0xd80   :  { %847 = vrot.lane.b32.xlu1 %v1667_v26, %s1772_s27 }
 0xdf2   :  { %v848_v27 = vpop.permute.xlu1 %847 }
 0xdf3   :  { %v1993_v28 = vmul.f32 %v1665_v19, %v848_v27 }
 0xdf5   :  { %v874_v30 = vmul.f32 %v872_v29, %v1993_v28 }
 0xdf7   :  { %879 = vrot.lane.b32.xlu0 %v874_v30, %s1773_s4 }
 0xe69   :  { %v880_v31 = vpop.permute.xlu0 %879 }
 0xe6a   :  { %1537 = vmatmul.mubr.msk.f32.vlgmr.msra.gmra.mrb[6].mxu1 %vm56_vm0, %v880_v31 }
 0xe6b   :  { %1609 = vmatpush3.bf16.msra.mxu1 %v1847_v10  ;;  %1558 = vmatprep.mubr.msk.f32.mxu1 %vm1771_vm2, %v1770_v2  ;;  %v1401_v10 = vld [vmem:[%s2089_s1 + $0x30] sm:$0xff] }
 0xe6c   :  { %1610 = vmatprep.subr.bf16.mxu1 %v1769_v1 }
 0xe6f   :  { %1612 = vmatpush3.bf16.msra.mxu1 %v1856_v14 }
 0xf3d   :  { %v949_v33 = vpop.f32.mrb[6].mxu1 }
 0xf3e   :  { %v953_v34 = vadd.f32 %v949_v33, %v198_v32  ;;  %v1538_v35 = vpop.f32.mrb[7].mxu1 }
 0xf40   :  { %1668 = vtanh.f32 %v953_v34  ;;  %v1400_v2 = vmul.f32 -1.442695, %v953_v34 }
 0xf42   :  { %1670 = vpow2.f32 %v1400_v2 }
 0xf4a   :  { %v1669_v36 = vpop.eup %1668 }
 0xf4b   :  { %963 = vrot.lane.b32.xlu1 %v1669_v36, %s1772_s27 }
 0xf4c   :  { %v1671_v1 = vpop.eup %1670 }
 0xf4d   :  { %v957_v37 = vadd.f32 1.0, %v1671_v1 }
 0xf4f   :  { %998 = vperm.xlu1 %1627, %v1401_v10   ;;  %1672 = vrcp.f32 %v957_v37 }
 0xf59   :  { %v1673_v14 = vpop.eup %1672 }
 0xf5a   :  { %v961_v42 = vmul.f32 %v1673_v14, %v875_v40 }
 0xfbd   :  { %v964_v39 = vpop.permute.xlu1 %963 }
 0xfbe   :  { %v966_v13 = vmul.f32 %v1673_v14, %v964_v39 }
 0xfc0   :  { %968 = vrot.lane.b32.xlu0 %v966_v13, %s1772_s27 }
 0xfce   :  { %v999_v48 = vpop.permute.xlu1 %998 }
0x1032   :  { %v969_v43 = vpop.permute.xlu0 %968 }
0x1033   :  { %v971_v44 = vadd.f32 %v969_v43, %v961_v42 }
0x1035   :  { %1674 = vtanh.f32 %v971_v44  ;;  %v1002_v63 = vmul.f32 %v999_v48, %v971_v44 }
0x103f   :  { %v1675_v45 = vpop.eup %1674 }
0x1040   :  { %974 = vrot.lane.b32.xlu0 %v1675_v45, %s1772_s27 }
0x10b2   :  { %v975_v46 = vpop.permute.xlu0 %974 }
0x10b3   :  { %v2011_v47 = vmul.f32 %v1673_v14, %v975_v46  ;;  %v350_v14 = vlaneseq }
0x10b5   :  { %v1001_v49 = vmul.f32 %v999_v48, %v2011_v47  ;;  %v351_v39 = vand.u32 127, %v350_v14  ;;  %v2048_v13 = vshrl.u32 %v350_v14, 7 }
0x10b7   :  { %1006 = vrot.lane.b32.xlu1 %v1001_v49, %s1773_s4  ;;  %v354_v40 = vsub.s32 %v351_v39, %v2048_v13 }
0x1129   :  { %v1007_v50 = vpop.permute.xlu1 %1006 }
0x112a   :  { %1548 = vmatmul.mubr.msk.f32.vlgmr.msra.gmra.mrb[12].mxu0 %vm56_vm0, %v1007_v50 }
0x11fd   :  { %v1076_v52 = vpop.f32.mrb[12].mxu0 }
0x11fe   :  { %v1080_v53 = vadd.f32 %v1076_v52, %v203_v51  ;;  %v1549_v54 = vpop.f32.mrb[13].mxu0 }
0x1200   :  { %1676 = vtanh.f32 %v1080_v53  ;;  %v1403_v57 = vmul.f32 -1.442695, %v1080_v53 }
0x1202   :  { %1678 = vpow2.f32 %v1403_v57 }
0x120a   :  { %v1677_v55 = vpop.eup %1676 }
0x120b   :  { %1090 = vrot.lane.b32.xlu0 %v1677_v55, %s1772_s27 }
0x120c   :  { %v1679_v58 = vpop.eup %1678 }
0x120d   :  { %v1084_v59 = vadd.f32 1.0, %v1679_v58 }
0x120f   :  { %1125 = vperm.xlu0 %1626, %v1404_v56   ;;  %1680 = vrcp.f32 %v1084_v59 }
0x1219   :  { %v1681_v60 = vpop.eup %1680 }
0x121a   :  { %v1088_v0 = vmul.f32 %v1681_v60, %v1002_v63 }
0x127d   :  { %v1091_v62 = vpop.permute.xlu0 %1090 }
0x127e   :  { %v1093_v17 = vmul.f32 %v1681_v60, %v1091_v62 }
0x1280   :  { %1095 = vrot.lane.b32.xlu1 %v1093_v17, %s1772_s27 }
0x128e   :  { %v1126_v9 = vpop.permute.xlu0 %1125 }
0x12f2   :  { %v1096_v3 = vpop.permute.xlu1 %1095 }
0x12f3   :  { %v1098_v4 = vadd.f32 %v1096_v3, %v1088_v0 }
0x12f5   :  { %1682 = vtanh.f32 %v1098_v4  ;;  %v1129_v10 = vmul.f32 %v1126_v9, %v1098_v4 }
0x12ff   :  { %v1683_v5 = vpop.eup %1682 }
0x1300   :  { %1101 = vrot.lane.b32.xlu1 %v1683_v5, %s1772_s27 }
0x1372   :  { %v1102_v6 = vpop.permute.xlu1 %1101 }
0x1373   :  { %v2024_v8 = vmul.f32 %v1681_v60, %v1102_v6 }
0x1375   :  { %v1128_v11 = vmul.f32 %v1126_v9, %v2024_v8 }
0x1377   :  { %1133 = vrot.lane.b32.xlu0 %v1128_v11, %s1773_s4 }
0x13e9   :  { %v1134_v12 = vpop.permute.xlu0 %1133 }
0x13ea   :  { %1559 = vmatmul.mubr.msk.f32.vlgmr.msra.gmra.mrb[8].mxu1 %vm56_vm0, %v1134_v12  ;;  %v1775_v12 = vmov 1966171168  }
0x14bd   :  { %v1203_v19 = vpop.f32.mrb[8].mxu1 }
0x14be   :  { %v1207_v20 = vadd.f32 %v1203_v19, %v208_v18  ;;  %v1560_v15 = vpop.f32.mrb[9].mxu1  ;;  %v1279_v18 = vunpack.c.l.s4 %v1775_v12 }
0x14c0   :  { %1684 = vtanh.f32 %v1207_v20  ;;  %v1406_v24 = vmul.f32 -1.442695, %v1207_v20 }
0x14c2   :  { %1686 = vpow2.f32 %v1406_v24 }
0x14ca   :  { %v1685_v21 = vpop.eup %1684 }
0x14cb   :  { %1217 = vrot.lane.b32.xlu1 %v1685_v21, %s1772_s27  ;;  %v1280_v21 = vunpack.c.0.s8 %v1279_v18 }
0x14cc   :  { %v1687_v25 = vpop.eup %1686 }
0x14cd   :  { %v1211_v26 = vadd.f32 1.0, %v1687_v25 }
0x14cf   :  { %338 = vrot.lane.b32.xlu1 %v1385_v23, %s1773_s4  ;;  %1688 = vrcp.f32 %v1211_v26 }
0x14d9   :  { %v1689_v27 = vpop.eup %1688 }
0x14da   :  { %v1215_v2 = vmul.f32 %v1689_v27, %v1129_v10 }
0x153d   :  { %v1218_v22 = vpop.permute.xlu1 %1217 }
0x153e   :  { %v1220_v16 = vmul.f32 %v1689_v27, %v1218_v22 }
0x1540   :  { %1222 = vrot.lane.b32.xlu0 %v1220_v16, %s1772_s27 }
0x1541   :  { %v339_v29 = vpop.permute.xlu1 %338 }
0x1542   :  { %v341_v30 = vmul.f32 %v339_v29, %v1887_v41  ;;  %v470_v31 = vmul.f32 %v1931_v7, %v339_v29  ;;  %v597_v41 = vmul.f32 %v1957_v38, %v339_v29  ;;  %v724_v37 = vmul.f32 %v1975_v61, %v339_v29 }
0x1543   :  { %v851_v50 = vmul.f32 %v1993_v28, %v339_v29  ;;  %v1105_v52 = vmul.f32 %v2024_v8, %v339_v29  ;;  %v978_v59 = vmul.f32 %v2011_v47, %v339_v29 }
0x1544   :  { %343 = vrot.lane.b32.xlu0 %v341_v30, %s1773_s4 }
0x1548   :  { %472 = vrot.lane.b32.xlu0 %v470_v31, %s1773_s4 }
0x15b2   :  { %v1223_v32 = vpop.permute.xlu0 %1222 }
0x15b3   :  { %v1225_v1 = vadd.f32 %v1223_v32, %v1215_v2 }
0x15b5   :  { %1690 = vtanh.f32 %v1225_v1 }
0x15b6   :  { %v344_v33 = vpop.permute.xlu0 %343 }
0x15b7   :  { %v346_v34 = vsel %vm56_vm0, %v344_v33, 0.0 }
0x15b8   :  { %347 = vadd.xlane.f32.xlu1 %v346_v34 }
0x15ba   :  { %v473_v35 = vpop.permute.xlu0 %472 }
0x15bb   :  { %v475_v36 = vsel %vm56_vm0, %v473_v35, 0.0 }
0x15bc   :  { %476 = vadd.xlane.f32.xlu0 %v475_v36 }
0x15bf   :  { %v1691_v7 = vpop.eup %1690 }
0x15c9   :  { %599 = vrot.lane.b32.xlu1 %v597_v41, %s1773_s4 }
0x15d2   :  { %1228 = vrot.lane.b32.xlu0 %v1691_v7, %s1772_s27  ;;  %s1776_s27 = smov [#allocation11]  }
0x15d3   :  { %s1364_s7 = sshll.u32 %s1776_s27, 4  ;;  %s1365_s7 = int_to_ptr.vmem [resolvable:$true] %s1364_s7 }
0x15d4   :  { %p1741_p3 = scmp.lt.s32.totalorder %s1365_s7, %s1365_s7 }
0x15d6   :  { %726 = vrot.lane.b32.xlu0 %v724_v37, %s1773_s4 }
0x1645   :  { %v348_v42 = vpop.xlane.xlu1 %347 }
0x1646   :  { %v355_v43 = vrot.slane %v348_v42, %v354_v40 }
0x1648   :  { %358 = vst.msk [vmem:[#allocation5] sm:$0x1] %vm357_vm3, %v355_v43 }
0x1649   :  { %v600_v38 = vpop.permute.xlu1 %599  ;;  %v477_v44 = vpop.xlane.xlu0 %476 }
0x164a   :  { %v482_v45 = vrot.slane %v477_v44, %v354_v40  ;;  %v602_v46 = vsel %vm56_vm0, %v600_v38, 0.0 }
0x164b   :  { %603 = vadd.xlane.f32.xlu1 %v602_v46 }
0x164c   :  { %485 = vst.msk [vmem:[#allocation5 + $0x1] sm:$0x1] %vm357_vm3, %v482_v45 }
0x164d   :  { %v1229_v61 = vpop.permute.xlu0 %1228 }
0x164e   :  { %v1231_v51 = vmul.f32 %v1689_v27, %v1229_v61 }
0x164f   :  { %v1258_v27 = vld [vmem:[#allocation5] sm:$0x1] }
0x1650   :  { %v1232_v53 = vmul.f32 %v1231_v51, %v339_v29  ;;  %v1283_v29 = vsub.s32 %v1280_v21, %v2048_v13 }
0x1651   :  { %v727_v48 = vpop.permute.xlu0 %726 }
0x1652   :  { %v729_v49 = vsel %vm56_vm0, %v727_v48, 0.0 }
0x1653   :  { %730 = vadd.xlane.f32.xlu0 %v729_v49  ;;  %v1259_v24 = vld [vmem:[#allocation5 + $0x1] sm:$0x1] }
0x1654   :  { %v1274_v16 = vcombine.low %v1258_v27, %v1259_v24 }
0x1656   :  { %v1284_v36 = vrot.slane %v1274_v16, %v1283_v29 }
0x165c   :  { %853 = vrot.lane.b32.xlu1 %v851_v50, %s1773_s4 }
0x1660   :  { %1107 = vrot.lane.b32.xlu1 %v1105_v52, %s1773_s4 }
0x1664   :  { %1234 = vrot.lane.b32.xlu1 %v1232_v53, %s1773_s4 }
0x16d8   :  { %v604_v54 = vpop.xlane.xlu1 %603 }
0x16d9   :  { %v609_v55 = vrot.slane %v604_v54, %v354_v40 }
0x16db   :  { %612 = vst.msk [vmem:[#allocation5 + $0x2] sm:$0x1] %vm357_vm3, %v609_v55 }
0x16dc   :  { %v854_v56 = vpop.permute.xlu1 %853 }
0x16dd   :  { %v856_v57 = vsel %vm56_vm0, %v854_v56, 0.0 }
0x16de   :  { %857 = vadd.xlane.f32.xlu0 %v856_v57 }
0x16e0   :  { %v731_v58 = vpop.xlane.xlu0 %730  ;;  %v1108_v60 = vpop.permute.xlu1 %1107 }
0x16e1   :  { %v736_v28 = vrot.slane %v731_v58, %v354_v40  ;;  %v1110_v62 = vsel %vm56_vm0, %v1108_v60, 0.0 }
0x16e2   :  { %v1260_v25 = vld [vmem:[#allocation5 + $0x2] sm:$0x1] }
0x16e3   :  { %739 = vst.msk [vmem:[#allocation5 + $0x3] sm:$0x1] %vm357_vm3, %v736_v28 }
0x16e4   :  { %v1235_v4 = vpop.permute.xlu1 %1234 }
0x16e5   :  { %v1237_v5 = vsel %vm56_vm0, %v1235_v4, 0.0 }
0x16ea   :  { %v1261_v15 = vld [vmem:[#allocation5 + $0x3] sm:$0x1] }
0x16eb   :  { %v1275_v26 = vcombine.low %v1260_v25, %v1261_v15 }
0x16ed   :  { %v1291_v32 = vrot.slane %v1275_v26, %v1283_v29 }
0x16f4   :  { %980 = vrot.lane.b32.xlu0 %v978_v59, %s1773_s4 }
0x1713   :  { %1111 = vadd.xlane.f32.xlu0 %v1110_v62 }
0x1729   :  { %1249 = vrot.lane.b32.xlu0 %v1231_v51, %s1773_s4  ;;  %s1736_s4 = scalar_lea.vmem %s1365_s7, 128 }
0x172a   :  { %p1737_p2 = scmp.ne.s32.totalorder %s1365_s7, %s1736_s4  ;;  %p1742_p4 = scmp.lt.s32.totalorder %s1736_s4, %s1736_s4 }
0x172c   :  { %p1743_p5 = por %p1742_p4, %p1741_p3 }
0x172e   :  { %p1744_p6 = pnand %p1743_p5, %p1737_p2 }
0x176b   :  { %v858_v17 = vpop.xlane.xlu0 %857 }
0x176c   :  { %v863_v63 = vrot.slane %v858_v17, %v354_v40 }
0x176e   :  { %866 = vst.msk [vmem:[#allocation5 + $0x4] sm:$0x1] %vm357_vm3, %v863_v63 }
0x176f   :  { %v981_v0 = vpop.permute.xlu0 %980 }
0x1770   :  { %v983_v3 = vsel %vm56_vm0, %v981_v0, 0.0 }
0x1771   :  { %984 = vadd.xlane.f32.xlu1 %v983_v3 }
0x1775   :  { %1238 = vadd.xlane.f32.xlu1 %v1237_v5  ;;  %v1262_v30 = vld [vmem:[#allocation5 + $0x4] sm:$0x1] }
0x1786   :  { %1254 = vrot.lane.b32.xlu1 %v1225_v1, %s1774_s5  ;;  %v1306_v1 = vcombine.low %v1284_v36, %v1291_v32 }
0x1788   :  { %v1314_v7 = vrot.slane %v1306_v1, %v1283_v29 }
0x17a0   :  { %v1112_v47 = vpop.xlane.xlu0 %1111 }
0x17a1   :  { %v1117_v6 = vrot.slane %v1112_v47, %v354_v40 }
0x17a3   :  { %1120 = vst.msk [vmem:[#allocation5 + $0x6] sm:$0x1] %vm357_vm3, %v1117_v6 }
0x17a4   :  { %v1250_v8 = vpop.permute.xlu0 %1249 }
0x17a5   :  { %1252 = vst.msk [vmem:[#allocation2] sm:$0xff] %vm56_vm0, %v1250_v8 }
0x17aa   :  { %v1264_v33 = vld [vmem:[#allocation5 + $0x6] sm:$0x1] }
0x17fe   :  { %v985_v9 = vpop.xlane.xlu1 %984 }
0x17ff   :  { %v990_v11 = vrot.slane %v985_v9, %v354_v40 }
0x1801   :  { %993 = vst.msk [vmem:[#allocation5 + $0x5] sm:$0x1] %vm357_vm3, %v990_v11 }
0x1802   :  { %v1239_v19 = vpop.xlane.xlu1 %1238 }
0x1803   :  { %v1244_v20 = vrot.slane %v1239_v19, %v354_v40 }
0x1805   :  { %1247 = vst.msk [vmem:[#allocation5 + $0x7] sm:$0x1] %vm357_vm3, %v1244_v20 }
0x1806   :  { %v1255_v23 = vpop.permute.xlu1 %1254 }
0x1807   :  { %1257 = vst.msk [vmem:[#allocation3] sm:$0xff] %vm56_vm0, %v1255_v23 }
0x1808   :  { %v1263_v22 = vld [vmem:[#allocation5 + $0x5] sm:$0x1] }
0x1809   :  { %v1276_v31 = vcombine.low %v1262_v30, %v1263_v22 }
0x180b   :  { %v1298_v10 = vrot.slane %v1276_v31, %v1283_v29 }
0x180c   :  { %v1265_v34 = vld [vmem:[#allocation5 + $0x7] sm:$0x1] }
0x180d   :  { %v1277_v35 = vcombine.low %v1264_v33, %v1265_v34 }
0x180f   :  { %v1305_v2 = vrot.slane %v1277_v35, %v1283_v29 }
0x1811   :  { %v1307_v41 = vcombine.low %v1298_v10, %v1305_v2 }
0x1813   :  { %v1321_v37 = vrot.slane %v1307_v41, %v1283_v29 }
0x1815   :  { %v1322_v14 = vcombine.low %v1314_v7, %v1321_v37 }
0x1817   :  { %1324 = vxpose.xlu1.b32.start.end [1/1] (short) (narrow) %v1322_v14, 8 }
0x1897   :  { %v1340_v39 = vpop.trf.xlu1 }
0x1898   :  { %1357 = vst.msk [vmem:[#allocation11] sm:$0xff] %vm1356_vm4, %v1340_v39 }
0x1899   :  { %1747 = shalt.err (!%p1744_p6)
}
0x189a   :  { %s1748_s10 = scalar_lea.hbm %s2094_s6, 128 }
0x189b   :  { %p1749_p7 = scmp.ne.s32.totalorder %s2094_s6, %s1748_s10  ;;  %p1752_p8 = scmp.lt.u32.totalorder %s1748_s10, %s2094_s6 }
0x189d   :  { %p1754_p9 = pnand %p1752_p8, %p1749_p7 }
0x189f   :  { %1757 = shalt.err (!%p1754_p9)
}
0x18a0   :  { %1367 = dma.vmem_to_hbm [thread:$0]  %s1365_s7, 128, %s2094_s6, [#allocation8]  }
0x18a1   :  { %1762 = dma.done.wait [#allocation8], 128  }
0x18a2   :  { %1763 = vsyncadd [#allocation8], 4294967168 }
0x18a3   :  { %1371 = vsyncpa [#allocation7], 1 }
0x18a4   :  { %1372 = vsyncpa [#allocation10], 1 }
0x18a5   :  { %1373 = vsyncpa [#allocation8], 1 }

</bundles_post_ra>
